<compile_context>
chip_gen: v5e
topology: v5e:2x2
jax: 0.10.0
libtpu: 0.0.40
codegen_flags: <defaults>
</compile_context>

<pallas_src>
import numpy as np
import jax
import jax.numpy as jnp
from jax import lax
from jax.experimental import pallas as pl
from jax.experimental.pallas import tpu as pltpu

KS = (3, 1, 1)              # DeformConv3d kernel_size (module default)
PAD = (1, 0, 0)             # DeformConv3d padding     (module default)
N_TAPS = KS[0] * KS[1] * KS[2]          # N = 3
_VMEM_LIMIT = 48 * 1024 * 1024          # explicit scoped-VMEM budget (fits v7x's 64 MiB)
# Offset conv / index arithmetic stays f32 HIGHEST so torch.round tie behaviour is kept;
# the data-path matmuls could be relaxed to bf16 on v6e/v7x if C/O grow.
_PRECISION = lax.Precision.HIGHEST
# TODO(synk): stride != 1 and non-default kernel_size / padding are not implemented.


def _pick_tile(M, requested=None, max_tile=1024):
    """Rows (flattened spatial) per grid step: must divide M and be a multiple of 128
    (lane-dense blocks) or equal M.  On v7x (64 MiB VMEM) prefer ~512."""
    if requested is not None:
        tm = min(int(requested), M)
        if M % tm == 0 and (tm % 128 == 0 or tm == M):
            return tm
    if M % 128 != 0:
        return M
    tm = 128
    while tm * 2 <= min(max_tile, M) and M % (tm * 2) == 0:
        tm *= 2
    return tm


# --------------------------------------------------------------------------------------
# Kernel 1: offset conv -> rounded flat gather indices, lane-dense.
# --------------------------------------------------------------------------------------
def _make_offset_index_kernel(tm, stride_x, stride_y, Hp, Wp, Dp):
    """stride_x = Wp*Dp, stride_y = Dp (flat strides of the padded volume)."""

    def kernel(xpr_ref, w1_ref, idx_ref):
        # xpr_ref: (P, C) padded input rows (resident per batch element)
        # w1_ref : (3, 9, C)   w1[t, o, c] = w_off[o, c, t]
        # idx_ref: (3, tm) int32 output block
        mi = pl.program_id(1)
        m0 = mi * tm
        if tm % 8 == 0:
            m0 = pl.multiple_of(m0, 8)

        # ---- offset conv: 3 row-shifted taps of the padded input, accumulated on MXU.
        # off[o, j] = sum_t sum_c w_off[o, c, t] * x_pad[c, m0 + j + t*stride_x]
        off = None
        for t in range(N_TAPS):
            tap = xpr_ref[pl.ds(m0 + t * stride_x, tm), :]                # (tm, C)
            part = lax.dot_general(w1_ref[t], tap, (((1,), (1,)), ((), ())),
                                   preferred_element_type=jnp.float32,
                                   precision=_PRECISION)                  # (9, tm)
            off = part if off is None else off + part

        # ---- p = p_0 + p_n + offset, built in-kernel from the row index (iota).
        lane = lax.broadcasted_iota(jnp.int32, (1, tm), 1).astype(jnp.float32)
        mf = lane + (mi * tm).astype(jnp.float32)                         # global row id
        h0 = jnp.floor(mf / float(stride_x))
        rem = mf - h0 * float(stride_x)
        w0 = jnp.floor(rem / float(stride_y))
        d0 = rem - w0 * float(stride_y)
        pn_x = lax.broadcasted_iota(jnp.int32, (3, 1), 0).astype(jnp.float32) - 1.0

        px = off[0:3, :] + (h0 + 1.0) + pn_x                              # (3, tm)
        py = off[3:6, :] + (w0 + 1.0)
        pz = off[6:9, :] + (d0 + 1.0)

        # ---- same bound / floor / clamp / round convention as the PyTorch module.
        mx = (px < 1.0) | (px > float(Hp) - 2.0)
        my = (py < 0.0) | (py > float(Wp) - 1.0)
        mz = (pz < 0.0) | (pz > float(Dp) - 1.0)
        px = jnp.where(mx, jnp.floor(px), px)
        py = jnp.where(my, jnp.floor(py), py)
        pz = jnp.where(mz, jnp.floor(pz), pz)
        px = jnp.clip(px, 0.0, float(Hp) - 1.0)
        py = jnp.clip(py, 0.0, float(Wp) - 1.0)
        pz = jnp.clip(pz, 0.0, float(Dp) - 1.0)
        qx = jnp.round(px).astype(jnp.int32)                              # == torch.round
        qy = jnp.round(py).astype(jnp.int32)
        qz = jnp.round(pz).astype(jnp.int32)
        # Clamped -> always inside the padded volume, so kernel 2's VMEM row gather
        # cannot go out of bounds.
        idx_ref[...] = qx * stride_x + qy * stride_y + qz                 # (3, tm) int32

    return kernel


# --------------------------------------------------------------------------------------
# Kernel 2: scalar-prefetch driven row gather + fused 1x1x1 conv, lane-dense output.
# --------------------------------------------------------------------------------------
def _make_gather_conv_kernel(M, tm):

    def kernel(idx_ref, xpr_ref, w2_ref, out_ref, gath_ref):
        # idx_ref : (B*3*M,) int32 flat gather indices in SMEM (scalar prefetch)
        # xpr_ref : (P, C) padded input rows, VMEM-resident per batch element
        # w2_ref  : (3, O, C)   w2[n, o, c] = w_conv[o, c*3 + n]
        # out_ref : (O, tm) lane-dense output block
        # gath_ref: VMEM scratch (3, tm, C)
        b = pl.program_id(0)
        mi = pl.program_id(1)
        base = b * (N_TAPS * M) + mi * tm

        def gather_row(j, carry):
            # true gather: one dynamic-slice row copy per tap (no one-hot matmul)
            for n in range(N_TAPS):
                i = idx_ref[base + n * M + j]
                gath_ref[n, pl.ds(j, 1), :] = xpr_ref[pl.ds(i, 1), :]
            return carry

        lax.fori_loop(0, tm, gather_row, 0)

        acc = None
        for n in range(N_TAPS):
            part = lax.dot_general(w2_ref[n], gath_ref[n],
                                   (((1,), (1,)), ((), ())),
                                   preferred_element_type=jnp.float32,
                                   precision=_PRECISION)                  # (O, tm)
            acc = part if acc is None else acc + part
        out_ref[...] = acc

    return kernel


def deform_conv3d(x, w_off, w_conv, *, tile_rows=None):
    """Deformable conv3d, kernel (3,1,1), stride 1, padding (1,0,0), no bias.

    x: (B, C, A, E, F) f32; w_off: (9, C, 3, 1, 1); w_conv: (O, 3*C, 1, 1, 1).
    Returns (B, O, A, E, F) f32.
    """
    B, C, A, E, F_ = x.shape
    O = w_conv.shape[0]
    M = A * E * F_
    Hp = A + 2 * PAD[0]
    P = Hp * E * F_
    stride_x, stride_y = E * F_, F_
    tm = _pick_tile(M, tile_rows)
    MT = M // tm

    # Glue (plain JAX): zero-pad the deform axis, flatten to row-gatherable (B, P, C),
    # re-lay the weights for the lane-dense kernels.
    x_pad = jnp.pad(x, ((0, 0), (0, 0), (PAD[0], PAD[0]), (0, 0), (0, 0)))
    xpr = jnp.transpose(x_pad.reshape(B, C, P), (0, 2, 1))                # (B, P, C)
    w1 = jnp.transpose(w_off[:, :, :, 0, 0], (2, 0, 1))                   # (3, 9, C)
    w2 = jnp.transpose(w_conv[:, :, 0, 0, 0].reshape(O, C, N_TAPS), (2, 0, 1))  # (3,O,C)

    # ---- kernel 1: offsets -> rounded flat gather indices (B, 3, M) int32 -------------
    idx = pl.pallas_call(
        _make_offset_index_kernel(tm, stride_x, stride_y, Hp, E, F_),
        out_shape=jax.ShapeDtypeStruct((B, N_TAPS, M), jnp.int32),
        grid_spec=pltpu.PrefetchScalarGridSpec(
            num_scalar_prefetch=0,
            grid=(B, MT),
            in_specs=[
                pl.BlockSpec((None, P, C), lambda b, mi: (b, 0, 0)),
                pl.BlockSpec((N_TAPS, 3 * N_TAPS, C), lambda b, mi: (0, 0, 0)),
            ],
            out_specs=pl.BlockSpec((None, N_TAPS, tm), lambda b, mi: (b, 0, mi)),
        ),
        compiler_params=pltpu.CompilerParams(
            dimension_semantics=("parallel", "parallel"),
            vmem_limit_bytes=_VMEM_LIMIT),
    )(xpr, w1)

    # ---- kernel 2: scalar-prefetch row gather + fused 1x1x1 conv -----------------------
    out = pl.pallas_call(
        _make_gather_conv_kernel(M, tm),
        out_shape=jax.ShapeDtypeStruct((B, O, M), jnp.float32),
        grid_spec=pltpu.PrefetchScalarGridSpec(
            num_scalar_prefetch=1,
            grid=(B, MT),
            in_specs=[
                pl.BlockSpec((None, P, C), lambda b, mi, idx_r: (b, 0, 0)),
                pl.BlockSpec((N_TAPS, O, C), lambda b, mi, idx_r: (0, 0, 0)),
            ],
            out_specs=pl.BlockSpec((None, O, tm), lambda b, mi, idx_r: (b, 0, mi)),
            scratch_shapes=[pltpu.VMEM((N_TAPS, tm, C), jnp.float32)],
        ),
        compiler_params=pltpu.CompilerParams(
            dimension_semantics=("parallel", "parallel"),
            vmem_limit_bytes=_VMEM_LIMIT),
    )(idx.reshape(B * N_TAPS * M), xpr, w2)

    return out.reshape(B, O, A, E, F_)


# --------------------------------------------------------------------------------------
# Fuse kernel: branch sum + PReLU + shortcut (1x1x1 conv / identity), lane-dense.
# --------------------------------------------------------------------------------------
def _fuse_kernel(a_ref, y1_ref, y2_ref, y3_ref, xc_ref, wsc_ref, out_ref):
    s = y1_ref[...] + y2_ref[...] + y3_ref[...]
    a = a_ref[0]
    act = jnp.where(s >= 0.0, s, a * s)                                   # PReLU
    sc = lax.dot_general(wsc_ref[...], xc_ref[...], (((1,), (0,)), ((), ())),
                         preferred_element_type=jnp.float32,
                         precision=_PRECISION)                            # (O, tm)
    out_ref[...] = act + sc


def _fused_combine(prelu_a, y1, y2, y3, xc, wsc, *, tile_rows=None):
    O, M = y1.shape
    C = xc.shape[0]
    tm = _pick_tile(M, tile_rows)
    return pl.pallas_call(
        _fuse_kernel,
        out_shape=jax.ShapeDtypeStruct((O, M), jnp.float32),
        grid_spec=pltpu.PrefetchScalarGridSpec(
            num_scalar_prefetch=0,
            grid=(M // tm,),
            in_specs=[
                pl.BlockSpec(memory_space=pltpu.MemorySpace.SMEM),
                pl.BlockSpec((O, tm), lambda i: (0, i)),
                pl.BlockSpec((O, tm), lambda i: (0, i)),
                pl.BlockSpec((O, tm), lambda i: (0, i)),
                pl.BlockSpec((C, tm), lambda i: (0, i)),
                pl.BlockSpec((O, C), lambda i: (0, 0)),
            ],
            out_specs=pl.BlockSpec((O, tm), lambda i: (0, i)),
        ),
        compiler_params=pltpu.CompilerParams(
            dimension_semantics=("parallel",),
            vmem_limit_bytes=_VMEM_LIMIT),
    )(prelu_a, y1, y2, y3, xc, wsc)


def asymmetric_convolution(x, params, *, tile_rows=None):
    """Pallas forward of AsymmetricConvolution.  x: (T, C, H, W) -> (T, O, H, W)."""
    T, C, H, W = x.shape
    O = params["w_conv1"].shape[0]
    M = T * H * W
    x5 = jnp.transpose(x, (1, 0, 2, 3))[None]                             # (1, C, T, H, W)

    y1 = deform_conv3d(x5, params["w_off1"], params["w_conv1"], tile_rows=tile_rows)
    y2 = deform_conv3d(jnp.transpose(x5, (0, 1, 3, 2, 4)),
                       params["w_off2"], params["w_conv2"], tile_rows=tile_rows)
    y3 = deform_conv3d(jnp.transpose(x5, (0, 1, 4, 3, 2)),
                       params["w_off3"], params["w_conv3"], tile_rows=tile_rows)

    # back to the common (T, H, W) order, flattened lane-dense as (O, M)
    y1f = y1[0].reshape(O, M)
    y2f = jnp.transpose(y2[0], (0, 2, 1, 3)).reshape(O, M)
    y3f = jnp.transpose(y3[0], (0, 3, 2, 1)).reshape(O, M)
    xc = x5[0].reshape(C, M)
    wsc = params.get("w_sc", None)
    wsc2 = jnp.eye(C, dtype=jnp.float32) if wsc is None else wsc[:, :, 0, 0, 0]

    out = _fused_combine(params["prelu_a"], y1f, y2f, y3f, xc, wsc2,
                         tile_rows=tile_rows)                             # (O, M)
    return jnp.transpose(out.reshape(O, T, H, W), (1, 0, 2, 3))


# --------------------------------------------------------------------------------------
# Pure-JAX reference mirroring the PyTorch forward, for verification.
# --------------------------------------------------------------------------------------
def _p0n_const(H, W, D):
    N = N_TAPS
    M = H * W * D
    ih, iw, idd = np.meshgrid(np.arange(1, H + 1), np.arange(1, W + 1),
                              np.arange(1, D + 1), indexing="ij")
    gx, gy, gz = np.meshgrid(
        np.arange(-(KS[0] - 1) // 2, (KS[0] - 1) // 2 + 1),
        np.arange(-(KS[1] - 1) // 2, (KS[1] - 1) // 2 + 1),
        np.arange(-(KS[2] - 1) // 2, (KS[2] - 1) // 2 + 1), indexing="ij")
    pnx, pny, pnz = gx.flatten(), gy.flatten(), gz.flatten()
    return np.concatenate([
        ih.reshape(M, 1) + pnx.reshape(1, N),
        iw.reshape(M, 1) + pny.reshape(1, N),
        idd.reshape(M, 1) + pnz.reshape(1, N)], axis=1).astype(np.float32)


def deform_conv3d_reference(x, w_off, w_conv):
    B, C, H, W, D = x.shape
    p0, p1, p2 = PAD
    N = N_TAPS
    O = w_conv.shape[0]
    hi = lax.Precision.HIGHEST
    dn = lax.conv_dimension_numbers(x.shape, w_off.shape, ("NCDHW", "OIDHW", "NCDHW"))
    offset = lax.conv_general_dilated(
        x, w_off, window_strides=(1, 1, 1),
        padding=[(p0, p0), (p1, p1), (p2, p2)],
        dimension_numbers=dn, precision=hi)
    xp = jnp.pad(x, ((0, 0), (0, 0), (p0, p0), (p2, p2), (p1, p1)))
    Hp, Wp, Dp = H + 2 * p0, W + 2 * p2, D + 2 * p1
    p = jnp.transpose(offset, (0, 2, 3, 4, 1)) + \
        jnp.asarray(_p0n_const(H, W, D).reshape(1, H, W, D, 3 * N))
    px, py, pz = p[..., :N], p[..., N:2 * N], p[..., 2 * N:]
    mx = (px < p0) | (px > Hp - 1 - p0)
    my = (py < p1) | (py > Wp - 1 - p1)
    mz = (pz < p2) | (pz > Dp - 1 - p2)
    px = jnp.where(mx, jnp.floor(px), px)
    py = jnp.where(my, jnp.floor(py), py)
    pz = jnp.where(mz, jnp.floor(pz), pz)
    px = jnp.clip(px, 0, Hp - 1)
    py = jnp.clip(py, 0, Wp - 1)
    pz = jnp.clip(pz, 0, Dp - 1)
    qx = jnp.round(px).astype(jnp.int32)
    qy = jnp.round(py).astype(jnp.int32)
    qz = jnp.round(pz).astype(jnp.int32)
    idx = qx * (Wp * Dp) + qy * Dp + qz
    xflat = xp.reshape(B, C, Hp * Wp * Dp)
    idxf = jnp.broadcast_to(idx.reshape(B, 1, -1), (B, C, H * W * D * N))
    x_off = jnp.take_along_axis(xflat, idxf, axis=-1).reshape(B, C, H, W, D, N)
    x_off = jnp.transpose(x_off, (0, 1, 5, 2, 3, 4)).reshape(B, C * N, H, W, D)
    return jnp.einsum("ok,bkhwd->bohwd", w_conv.reshape(O, C * N), x_off, precision=hi)


def asymmetric_convolution_reference(x, params):
    hi = lax.Precision.HIGHEST
    x5 = jnp.transpose(x, (1, 0, 2, 3))[None]
    y1 = deform_conv3d_reference(x5, params["w_off1"], params["w_conv1"])
    y2 = jnp.transpose(
        deform_conv3d_reference(jnp.transpose(x5, (0, 1, 3, 2, 4)),
                                params["w_off2"], params["w_conv2"]), (0, 1, 3, 2, 4))
    y3 = jnp.transpose(
        deform_conv3d_reference(jnp.transpose(x5, (0, 1, 4, 3, 2)),
                                params["w_off3"], params["w_conv3"]), (0, 1, 4, 3, 2))
    s = y1 + y2 + y3
    a = params["prelu_a"][0]
    act = jnp.where(s >= 0.0, s, a * s)
    wsc = params.get("w_sc", None)
    sc = x5 if wsc is None else jnp.einsum("oc,bcthw->bothw",
                                           wsc[:, :, 0, 0, 0], x5, precision=hi)
    return jnp.transpose((act + sc)[0], (1, 0, 2, 3))


if __name__ == "__main__":
    # Input (T, C, H, W) as the module's forward implies; in_cha != out_cha exercises
    # the 1x1x1 conv shortcut.  tile_rows=128 forces a multi-tile spatial grid.
    T, C_in, H, W = 8, 4, 8, 8
    C_out = 8

    key = jax.random.PRNGKey(0)
    ks = jax.random.split(key, 9)
    x = jax.random.normal(ks[0], (T, C_in, H, W), jnp.float32)

    def off_w(k):
        return 0.1 * jax.random.normal(k, (3 * N_TAPS, C_in) + KS, jnp.float32)

    def conv_w(k):
        return 0.1 * jax.random.normal(k, (C_out, C_in * N_TAPS, 1, 1, 1), jnp.float32)

    params = {
        "w_off1": off_w(ks[1]), "w_conv1": conv_w(ks[2]),
        "w_off2": off_w(ks[3]), "w_conv2": conv_w(ks[4]),
        "w_off3": off_w(ks[5]), "w_conv3": conv_w(ks[6]),
        "w_sc": 0.1 * jax.random.normal(ks[7], (C_out, C_in, 1, 1, 1), jnp.float32),
        "prelu_a": jnp.full((1,), 0.25, jnp.float32),     # nn.PReLU() default init
    }

    out = asymmetric_convolution(x, params, tile_rows=128)
    jax.block_until_ready(out)

    ref = asymmetric_convolution_reference(x, params)
    assert out.shape == (T, C_out, H, W), out.shape
    if not np.allclose(np.asarray(out), np.asarray(ref), atol=2e-3, rtol=2e-3):
        diff = float(np.max(np.abs(np.asarray(out) - np.asarray(ref))))
        raise AssertionError(f"Pallas kernels mismatch vs reference, max abs diff = {diff}")
    print("KERNEL_OK")
</pallas_src>

<mosaic_0001>
module attributes {stable_mosaic.version = 11 : i64} {
  func.func @kernel(%arg0: i32, %arg1: i32, %arg2: memref<1x640x4xf32, #tpu.memory_space<vmem>>, %arg3: memref<3x9x4xf32, #tpu.memory_space<vmem>>, %arg4: memref<1x3x128xi32, #tpu.memory_space<vmem>>) attributes {dimension_semantics = [#tpu.dimension_semantics<parallel>, #tpu.dimension_semantics<parallel>], iteration_bounds = array<i64: 1, 4>, scalar_prefetch = 0 : i64, scratch_operands = 0 : i64, tpu.core_type = #tpu.core_type<tc>, window_params = [{transform_indices = @transform_0, window_bounds = array<i64: 1, 640, 4>}, {pipeline_mode = #tpu.pipeline_mode<synchronous>, transform_indices = @transform_1, window_bounds = array<i64: 3, 9, 4>}, {transform_indices = @transform_2, window_bounds = array<i64: 1, 3, 128>}]} {
    %c128_i32 = arith.constant 128 : i32
    %0 = arith.muli %arg1, %c128_i32 : i32
    %1 = tpu.assume_multiple %0, 8 : i32
    %c0_i32 = arith.constant 0 : i32
    %2 = arith.addi %1, %c0_i32 : i32
    %c0 = arith.constant 0 : index
    %3 = arith.index_cast %2 : i32 to index
    %c0_0 = arith.constant 0 : index
    %4 = vector.load %arg2[%c0, %3, %c0_0] : memref<1x640x4xf32, #tpu.memory_space<vmem>>, vector<1x128x4xf32>
    %5 = vector.shape_cast %4 : vector<1x128x4xf32> to vector<128x4xf32>
    %c0_1 = arith.constant 0 : index
    %c0_2 = arith.constant 0 : index
    %c0_3 = arith.constant 0 : index
    %6 = vector.load %arg3[%c0_1, %c0_2, %c0_3] : memref<3x9x4xf32, #tpu.memory_space<vmem>>, vector<1x9x4xf32>
    %7 = vector.shape_cast %6 : vector<1x9x4xf32> to vector<9x4xf32>
    %cst = arith.constant dense<0.000000e+00> : vector<9x128xf32>
    %8 = tpu.matmul %7, %5, %cst {dimension_numbers = #tpu.dot_dimension_numbers<[1], [1], [0], [0], [0, 0, 1, 0], [], []>, precision = #tpu.contract_precision<fp32>} : vector<9x4xf32>, vector<128x4xf32>, vector<9x128xf32> -> vector<9x128xf32>
    %c64_i32 = arith.constant 64 : i32
    %9 = arith.addi %1, %c64_i32 : i32
    %c0_4 = arith.constant 0 : index
    %10 = arith.index_cast %9 : i32 to index
    %c0_5 = arith.constant 0 : index
    %11 = vector.load %arg2[%c0_4, %10, %c0_5] : memref<1x640x4xf32, #tpu.memory_space<vmem>>, vector<1x128x4xf32>
    %12 = vector.shape_cast %11 : vector<1x128x4xf32> to vector<128x4xf32>
    %c1 = arith.constant 1 : index
    %c0_6 = arith.constant 0 : index
    %c0_7 = arith.constant 0 : index
    %13 = vector.load %arg3[%c1, %c0_6, %c0_7] : memref<3x9x4xf32, #tpu.memory_space<vmem>>, vector<1x9x4xf32>
    %14 = vector.shape_cast %13 : vector<1x9x4xf32> to vector<9x4xf32>
    %cst_8 = arith.constant dense<0.000000e+00> : vector<9x128xf32>
    %15 = tpu.matmul %14, %12, %cst_8 {dimension_numbers = #tpu.dot_dimension_numbers<[1], [1], [0], [0], [0, 0, 1, 0], [], []>, precision = #tpu.contract_precision<fp32>} : vector<9x4xf32>, vector<128x4xf32>, vector<9x128xf32> -> vector<9x128xf32>
    %16 = arith.addf %8, %15 : vector<9x128xf32>
    %c128_i32_9 = arith.constant 128 : i32
    %17 = arith.addi %1, %c128_i32_9 : i32
    %c0_10 = arith.constant 0 : index
    %18 = arith.index_cast %17 : i32 to index
    %c0_11 = arith.constant 0 : index
    %19 = vector.load %arg2[%c0_10, %18, %c0_11] : memref<1x640x4xf32, #tpu.memory_space<vmem>>, vector<1x128x4xf32>
    %20 = vector.shape_cast %19 : vector<1x128x4xf32> to vector<128x4xf32>
    %c2 = arith.constant 2 : index
    %c0_12 = arith.constant 0 : index
    %c0_13 = arith.constant 0 : index
    %21 = vector.load %arg3[%c2, %c0_12, %c0_13] : memref<3x9x4xf32, #tpu.memory_space<vmem>>, vector<1x9x4xf32>
    %22 = vector.shape_cast %21 : vector<1x9x4xf32> to vector<9x4xf32>
    %cst_14 = arith.constant dense<0.000000e+00> : vector<9x128xf32>
    %23 = tpu.matmul %22, %20, %cst_14 {dimension_numbers = #tpu.dot_dimension_numbers<[1], [1], [0], [0], [0, 0, 1, 0], [], []>, precision = #tpu.contract_precision<fp32>} : vector<9x4xf32>, vector<128x4xf32>, vector<9x128xf32> -> vector<9x128xf32>
    %24 = arith.addf %16, %23 : vector<9x128xf32>
    %25 = tpu.iota {dimensions = array<i32: 1>} : vector<1x128xi32>
    %26 = arith.sitofp %25 : vector<1x128xi32> to vector<1x128xf32>
    %c128_i32_15 = arith.constant 128 : i32
    %27 = arith.muli %arg1, %c128_i32_15 : i32
    %28 = arith.sitofp %27 : i32 to f32
    %29 = vector.broadcast %28 : f32 to vector<1x128xf32>
    %30 = arith.addf %26, %29 : vector<1x128xf32>
    %cst_16 = arith.constant 6.400000e+01 : f32
    %31 = vector.broadcast %cst_16 : f32 to vector<1x128xf32>
    %32 = arith.divf %30, %31 : vector<1x128xf32>
    %33 = math.floor %32 : vector<1x128xf32>
    %cst_17 = arith.constant 6.400000e+01 : f32
    %34 = vector.broadcast %cst_17 : f32 to vector<1x128xf32>
    %35 = arith.mulf %33, %34 : vector<1x128xf32>
    %36 = arith.subf %30, %35 : vector<1x128xf32>
    %cst_18 = arith.constant 8.000000e+00 : f32
    %37 = vector.broadcast %cst_18 : f32 to vector<1x128xf32>
    %38 = arith.divf %36, %37 : vector<1x128xf32>
    %39 = math.floor %38 : vector<1x128xf32>
    %cst_19 = arith.constant 8.000000e+00 : f32
    %40 = vector.broadcast %cst_19 : f32 to vector<1x128xf32>
    %41 = arith.mulf %39, %40 : vector<1x128xf32>
    %42 = arith.subf %36, %41 : vector<1x128xf32>
    %43 = tpu.iota {dimensions = array<i32: 0>} : vector<3x1xi32>
    %44 = arith.sitofp %43 : vector<3x1xi32> to vector<3x1xf32>
    %cst_20 = arith.constant 1.000000e+00 : f32
    %45 = vector.broadcast %cst_20 : f32 to vector<3x1xf32>
    %46 = arith.subf %44, %45 : vector<3x1xf32>
    %47 = vector.extract_strided_slice %24 {offsets = [0, 0], sizes = [3, 128], strides = [1, 1]} : vector<9x128xf32> to vector<3x128xf32>
    %cst_21 = arith.constant 1.000000e+00 : f32
    %48 = vector.broadcast %cst_21 : f32 to vector<1x128xf32>
    %49 = arith.addf %33, %48 : vector<1x128xf32>
    %50 = vector.broadcast %49 : vector<1x128xf32> to vector<3x128xf32>
    %51 = arith.addf %47, %50 : vector<3x128xf32>
    %52 = vector.broadcast %46 : vector<3x1xf32> to vector<3x128xf32>
    %53 = arith.addf %51, %52 : vector<3x128xf32>
    %54 = vector.extract_strided_slice %24 {offsets = [3, 0], sizes = [3, 128], strides = [1, 1]} : vector<9x128xf32> to vector<3x128xf32>
    %cst_22 = arith.constant 1.000000e+00 : f32
    %55 = vector.broadcast %cst_22 : f32 to vector<1x128xf32>
    %56 = arith.addf %39, %55 : vector<1x128xf32>
    %57 = vector.broadcast %56 : vector<1x128xf32> to vector<3x128xf32>
    %58 = arith.addf %54, %57 : vector<3x128xf32>
    %59 = vector.extract_strided_slice %24 {offsets = [6, 0], sizes = [3, 128], strides = [1, 1]} : vector<9x128xf32> to vector<3x128xf32>
    %cst_23 = arith.constant 1.000000e+00 : f32
    %60 = vector.broadcast %cst_23 : f32 to vector<1x128xf32>
    %61 = arith.addf %42, %60 : vector<1x128xf32>
    %62 = vector.broadcast %61 : vector<1x128xf32> to vector<3x128xf32>
    %63 = arith.addf %59, %62 : vector<3x128xf32>
    %cst_24 = arith.constant 1.000000e+00 : f32
    %64 = vector.broadcast %cst_24 : f32 to vector<3x128xf32>
    %65 = arith.cmpf olt, %53, %64 : vector<3x128xf32>
    %cst_25 = arith.constant 8.000000e+00 : f32
    %66 = vector.broadcast %cst_25 : f32 to vector<3x128xf32>
    %67 = arith.cmpf ogt, %53, %66 : vector<3x128xf32>
    %68 = arith.ori %65, %67 : vector<3x128xi1>
    %cst_26 = arith.constant 0.000000e+00 : f32
    %69 = vector.broadcast %cst_26 : f32 to vector<3x128xf32>
    %70 = arith.cmpf olt, %58, %69 : vector<3x128xf32>
    %cst_27 = arith.constant 7.000000e+00 : f32
    %71 = vector.broadcast %cst_27 : f32 to vector<3x128xf32>
    %72 = arith.cmpf ogt, %58, %71 : vector<3x128xf32>
    %73 = arith.ori %70, %72 : vector<3x128xi1>
    %cst_28 = arith.constant 0.000000e+00 : f32
    %74 = vector.broadcast %cst_28 : f32 to vector<3x128xf32>
    %75 = arith.cmpf olt, %63, %74 : vector<3x128xf32>
    %cst_29 = arith.constant 7.000000e+00 : f32
    %76 = vector.broadcast %cst_29 : f32 to vector<3x128xf32>
    %77 = arith.cmpf ogt, %63, %76 : vector<3x128xf32>
    %78 = arith.ori %75, %77 : vector<3x128xi1>
    %79 = math.floor %53 : vector<3x128xf32>
    %80 = arith.select %68, %79, %53 : vector<3x128xi1>, vector<3x128xf32>
    %81 = math.floor %58 : vector<3x128xf32>
    %82 = arith.select %73, %81, %58 : vector<3x128xi1>, vector<3x128xf32>
    %83 = math.floor %63 : vector<3x128xf32>
    %84 = arith.select %78, %83, %63 : vector<3x128xi1>, vector<3x128xf32>
    %cst_30 = arith.constant 0.000000e+00 : f32
    %cst_31 = arith.constant 9.000000e+00 : f32
    %85 = vector.broadcast %cst_30 : f32 to vector<3x128xf32>
    %86 = arith.maximumf %85, %80 : vector<3x128xf32>
    %87 = vector.broadcast %cst_31 : f32 to vector<3x128xf32>
    %88 = arith.minimumf %87, %86 : vector<3x128xf32>
    %cst_32 = arith.constant 0.000000e+00 : f32
    %cst_33 = arith.constant 7.000000e+00 : f32
    %89 = vector.broadcast %cst_32 : f32 to vector<3x128xf32>
    %90 = arith.maximumf %89, %82 : vector<3x128xf32>
    %91 = vector.broadcast %cst_33 : f32 to vector<3x128xf32>
    %92 = arith.minimumf %91, %90 : vector<3x128xf32>
    %cst_34 = arith.constant 0.000000e+00 : f32
    %cst_35 = arith.constant 7.000000e+00 : f32
    %93 = vector.broadcast %cst_34 : f32 to vector<3x128xf32>
    %94 = arith.maximumf %93, %84 : vector<3x128xf32>
    %95 = vector.broadcast %cst_35 : f32 to vector<3x128xf32>
    %96 = arith.minimumf %95, %94 : vector<3x128xf32>
    %97 = math.roundeven %88 : vector<3x128xf32>
    %98 = arith.fptosi %97 : vector<3x128xf32> to vector<3x128xi32>
    %99 = math.roundeven %92 : vector<3x128xf32>
    %100 = arith.fptosi %99 : vector<3x128xf32> to vector<3x128xi32>
    %101 = math.roundeven %96 : vector<3x128xf32>
    %102 = arith.fptosi %101 : vector<3x128xf32> to vector<3x128xi32>
    %c64_i32_36 = arith.constant 64 : i32
    %103 = vector.broadcast %c64_i32_36 : i32 to vector<3x128xi32>
    %104 = arith.muli %98, %103 : vector<3x128xi32>
    %c8_i32 = arith.constant 8 : i32
    %105 = vector.broadcast %c8_i32 : i32 to vector<3x128xi32>
    %106 = arith.muli %100, %105 : vector<3x128xi32>
    %107 = arith.addi %104, %106 : vector<3x128xi32>
    %108 = arith.addi %107, %102 : vector<3x128xi32>
    %c0_37 = arith.constant 0 : index
    %c0_38 = arith.constant 0 : index
    %c0_39 = arith.constant 0 : index
    %109 = vector.load %arg4[%c0_37, %c0_38, %c0_39] : memref<1x3x128xi32, #tpu.memory_space<vmem>>, vector<1x3x128xi32>
    %110 = vector.shape_cast %109 : vector<1x3x128xi32> to vector<3x128xi32>
    %111 = vector.shape_cast %108 : vector<3x128xi32> to vector<1x3x128xi32>
    tpu.vector_store %arg4[%c0_37, %c0_38, %c0_39], %111 {strides = array<i32>} : memref<1x3x128xi32, #tpu.memory_space<vmem>>, vector<1x3x128xi32>,
    return
  }
  func.func @transform_0(%arg0: i32, %arg1: i32) -> (i32, i32, i32) {
    %c0_i32 = arith.constant 0 : i32
    %c0_i32_0 = arith.constant 0 : i32
    %c0_i32_1 = arith.constant 0 : i32
    return %arg0, %c0_i32, %c0_i32_0 : i32, i32, i32
  }
  func.func @transform_1(%arg0: i32, %arg1: i32) -> (i32, i32, i32) {
    %c0_i32 = arith.constant 0 : i32
    %c0_i32_0 = arith.constant 0 : i32
    %c0_i32_1 = arith.constant 0 : i32
    %c0_i32_2 = arith.constant 0 : i32
    return %c0_i32, %c0_i32_0, %c0_i32_1 : i32, i32, i32
  }
  func.func @transform_2(%arg0: i32, %arg1: i32) -> (i32, i32, i32) {
    %c0_i32 = arith.constant 0 : i32
    %c0_i32_0 = arith.constant 0 : i32
    return %arg0, %c0_i32, %arg1 : i32, i32, i32
  }
}

</mosaic_0001>

<bundles_post_ra>
// kernel: tpu_custom_call.1
= control target key start
LH: loop header
LB: loop body
LE: loop exit
PB: predicated region body
PF: predicated region fallthrough
CT: control target
= control target key end

     0   :  { %s1841_s9 = smov 0   ;;  %s1843_s10 = smov 0   ;;  %s2640_s0 = inlined_call_operand.vmem [shape: f32[1,640,4], index: 0, kind: input, shape index: {}]   ;;  %s2641_s1 = inlined_call_operand.vmem [shape: f32[3,9,4], index: 1, kind: input, shape index: {}]   ;;  %s2642_s2 = inlined_call_operand.vmem [shape: s32[1,3,512], index: 2, kind: output, shape index: {}]  }
   0x1   :  { %s1845_s11 = smov 0  }
   0x2 LB: > { %s21_s12 = sadd.s32 1, %s1818_s10  ;;  %p1682_p0 = scmp.ge.s32.totalorder %s1822_s11, 1  ;;  %s1822_s11 = sphi %s1845_s11, %s12_s11   ;;  %s1818_s10 = sphi %s1843_s10, %s2644_s10   ;;  %s1814_s9 = sphi %s1841_s9, %s2643_s9  }
   0x3   : > { %p22_p1 = scmp.ge.s32.totalorder %s21_s12, 4  ;;  %p126_p2 = scmp.lt.s32.totalorder %s1822_s11, 5 }
   0x5   : > { %s2646_s12 = smov (%p22_p1, %s21_s12), 0  ;;  %p127_p3 = pnand %p1682_p0, %p126_p2 }
   0x6   : > { %s1684_s13 = sshll.u32 (!%p127_p3), %s1814_s9, 7  ;;  %p158_p4 = scmp.lt.s32.totalorder (!%p127_p3), %s1814_s9, 3 }
   0x7   : > { %130 = sbr.rel (%p127_p3) target bundleno = 493 (0x1ed), region = 28  ;;  %s1867_s16 = scalar_lea.vmem (!%p127_p3), %s2640_s0, %s1684_s13 }
   0x8   : > { %s1510_s29 = scvt.s32.f32 (!%p127_p3), %s1684_s13 }
   0xc   : > { %vm205_vm0 = vcmask 31744   ;;  %v1701_v0 = vld [vmem:[%s1867_s16 + $0xb8] sm:$0xff]  ;;  %v1700_v1 = vld [vmem:[%s1867_s16 + $0xb0] sm:$0xff]  ;;  %v1699_v2 = vld [vmem:[%s1867_s16 + $0xa8] sm:$0xff]  ;;  %s2648_s9 = smov (!%p158_p4, %s1814_s9), 3  ;;  %vm1583_vm15 = vcmask 1041408  }
   0xd   : > { %v258_v3 = vsel %vm205_vm0, %v1701_v0, 0  ;;  %v255_v4 = vsel %vm205_vm0, %v1700_v1, 0  ;;  %v252_v5 = vsel %vm205_vm0, %v1699_v2, 0  ;;  %v1698_v6 = vld [vmem:[%s1867_s16 + $0xa0] sm:$0xff]  ;;  %v1697_v7 = vld [vmem:[%s1867_s16 + $0x98] sm:$0xff]  ;;  %v1696_v17 = vld [vmem:[%s1867_s16 + $0x90] sm:$0xff] }
   0xe   : > { %v1877_v8 = vand.u32 4294901760, %v258_v3  ;;  %v1879_v9 = vand.u32 4294901760, %v255_v4  ;;  %v1881_v10 = vand.u32 4294901760, %v252_v5  ;;  %v249_v11 = vsel %vm205_vm0, %v1698_v6, 0  ;;  %v1695_v26 = vld [vmem:[%s1867_s16 + $0x88] sm:$0xff]  ;;  %v1694_v34 = vld [vmem:[%s1867_s16 + $0x80] sm:$0xff] }
   0xf   : > { %v1884_v12 = vand.u32 4294901760, %v249_v11  ;;  %v246_v16 = vsel %vm205_vm0, %v1697_v7, 0  ;;  %v243_v21 = vsel %vm205_vm0, %v1696_v17, 0  ;;  %v240_v29 = vsel %vm205_vm0, %v1695_v26, 0  ;;  %v1693_v41 = vld [vmem:[%s1867_s16 + $0x78] sm:$0xff]  ;;  %v1692_v48 = vld [vmem:[%s1867_s16 + $0x70] sm:$0xff] }
  0x10   : > { %261 = vmatpush.xpose.msra.mxu0 %v1877_v8  ;;  %v1888_v13 = vsub.f32 %v258_v3, %v1877_v8  ;;  %474 = vmatpush.xpose.msra.mxu3 %v1877_v8  ;;  %v1892_v14 = vsub.f32 %v255_v4, %v1879_v9  ;;  %v1895_v15 = vsub.f32 %v252_v5, %v1881_v10  ;;  %v1902_v20 = vand.u32 4294901760, %v246_v16  ;;  %v1691_v54 = vld [vmem:[%s1867_s16 + $0x68] sm:$0xff]  ;;  %v1690_v62 = vld [vmem:[%s1867_s16 + $0x60] sm:$0xff]  ;;  %v1689_v5 = vld [vmem:[%s1867_s16 + $0x58] sm:$0xff]  ;;  %s1683_s30 = sshll.u32 %s2648_s9, 2 }
  0x11   : > { %v1914_v24 = vsub.f32 %v249_v11, %v1884_v12  ;;  %v1919_v28 = vand.u32 4294901760, %v243_v21  ;;  %v1933_v35 = vand.u32 4294901760, %v240_v29  ;;  %v237_v36 = vsel %vm205_vm0, %v1694_v34, 0  ;;  %v1687_v34 = vld [vmem:[%s1867_s16 + $0x48] sm:$0xff]  ;;  %s163_s5 = scalar_lea.vmem %s2642_s2, %s1683_s30 }
  0x12   : > { %416 = vmatpush.xpose.msra.mxu2 %v1888_v13  ;;  %v311_v18 = vand.u32 4294901760, %v1888_v13  ;;  %v317_v19 = vand.u32 4294901760, %v1892_v14  ;;  %v323_v25 = vand.u32 4294901760, %v1895_v15  ;;  %v1927_v32 = vsub.f32 %v246_v16, %v1902_v20 }
  0x13   : > { %v329_v33 = vand.u32 4294901760, %v1914_v24  ;;  %v1941_v39 = vsub.f32 %v243_v21, %v1919_v28  ;;  %v1947_v42 = vand.u32 4294901760, %v237_v36  ;;  %v1954_v45 = vsub.f32 %v240_v29, %v1933_v35 }
  0x14   : > { %263 = vmatpush.xpose.msra.mxu0 %v1879_v9  ;;  %v312_v22 = vsub.f32 %v1888_v13, %v311_v18  ;;  %476 = vmatpush.xpose.msra.mxu3 %v1879_v9  ;;  %v318_v23 = vsub.f32 %v1892_v14, %v317_v19  ;;  %v324_v31 = vsub.f32 %v1895_v15, %v323_v25  ;;  %v335_v40 = vand.u32 4294901760, %v1927_v32 }
  0x15   : > { %v330_v38 = vsub.f32 %v1914_v24, %v329_v33  ;;  %v341_v46 = vand.u32 4294901760, %v1941_v39  ;;  %v234_v47 = vsel %vm205_vm0, %v1693_v41, 0  ;;  %v1962_v49 = vsub.f32 %v237_v36, %v1947_v42 }
  0x16   : > { %419 = vmatpush.xpose.msra.mxu2 %v1892_v14  ;;  %v313_v27 = vand.u32 4294901760, %v312_v22  ;;  %v319_v30 = vand.u32 4294901760, %v318_v23  ;;  %v325_v37 = vand.u32 4294901760, %v324_v31  ;;  %v336_v44 = vsub.f32 %v1927_v32, %v335_v40  ;;  %v1688_v22 = vld [vmem:[%s1867_s16 + $0x50] sm:$0xff] }
  0x17   : > { %v331_v43 = vand.u32 4294901760, %v330_v38  ;;  %v342_v51 = vsub.f32 %v1941_v39, %v341_v46  ;;  %v1968_v52 = vand.u32 4294901760, %v234_v47  ;;  %v347_v53 = vand.u32 4294901760, %v1954_v45 }
  0x18   : > { %265 = vmatpush.xpose.msra.mxu0 %v1881_v10  ;;  %314 = vmatpush.xpose.msra.mxu1 %v313_v27  ;;  %v337_v50 = vand.u32 4294901760, %v336_v44  ;;  %v231_v55 = vsel %vm205_vm0, %v1692_v48, 0  ;;  %v353_v56 = vand.u32 4294901760, %v1962_v49  ;;  %v228_v57 = vsel %vm205_vm0, %v1691_v54, 0 }
  0x19   : > { %478 = vmatpush.xpose.msra.mxu3 %v1881_v10  ;;  %v343_v58 = vand.u32 4294901760, %v342_v51  ;;  %v348_v59 = vsub.f32 %v1954_v45, %v347_v53  ;;  %v1982_v60 = vsub.f32 %v234_v47, %v1968_v52  ;;  %v1984_v61 = vand.u32 4294901760, %v231_v55  ;;  %v1686_v47 = vld [vmem:[%s1867_s16 + $0x40] sm:$0xff] }
  0x1a   : > { %422 = vmatpush.xpose.msra.mxu2 %v1895_v15  ;;  %v354_v63 = vsub.f32 %v1962_v49, %v353_v56  ;;  %v1992_v0 = vand.u32 4294901760, %v228_v57  ;;  %v225_v4 = vsel %vm205_vm0, %v1690_v62, 0  ;;  %v222_v21 = vsel %vm205_vm0, %v1689_v5, 0 }
  0x1b   : > { %v349_v1 = vand.u32 4294901760, %v348_v59  ;;  %v1996_v2 = vsub.f32 %v231_v55, %v1984_v61  ;;  %v1999_v3 = vand.u32 4294901760, %v1982_v60  ;;  %v2005_v6 = vand.u32 4294901760, %v225_v4 }
  0x1c   : > { %267 = vmatpush.xpose.msra.mxu0 %v1884_v12  ;;  %320 = vmatpush.xpose.msra.mxu1 %v319_v30  ;;  %v355_v7 = vand.u32 4294901760, %v354_v63  ;;  %v2011_v16 = vsub.f32 %v228_v57, %v1992_v0  ;;  %v2026_v29 = vand.u32 4294901760, %v222_v21  ;;  %v219_v31 = vsel %vm205_vm0, %v1688_v22, 0 }
  0x1d   : > { %480 = vmatpush.xpose.msra.mxu3 %v1884_v12  ;;  %v360_v11 = vsub.f32 %v1982_v60, %v1999_v3  ;;  %v2014_v17 = vand.u32 4294901760, %v1996_v2  ;;  %v2021_v23 = vsub.f32 %v225_v4, %v2005_v6  ;;  %v216_v44 = vsel %vm205_vm0, %v1687_v34, 0 }
  0x1e   : > { %425 = vmatpush.xpose.msra.mxu2 %v1914_v24  ;;  %v2029_v30 = vand.u32 4294901760, %v2011_v16  ;;  %v2042_v41 = vsub.f32 %v222_v21, %v2026_v29  ;;  %v2056_v54 = vand.u32 4294901760, %v216_v44  ;;  %v213_v57 = vsel %vm205_vm0, %v1686_v47, 0  ;;  %v170_v47 = vld [vmem:[%s1867_s16 + $0x20] sm:$0xff] }
  0x1f   : > { %v361_v26 = vand.u32 4294901760, %v360_v11  ;;  %v366_v27 = vsub.f32 %v1996_v2, %v2014_v17  ;;  %v2036_v36 = vand.u32 4294901760, %v2021_v23  ;;  %v2070_v63 = vand.u32 4294901760, %v213_v57 }
  0x20   : > { %269 = vmatpush.xpose.msra.mxu0 %v1902_v20  ;;  %326 = vmatpush.xpose.msra.mxu1 %v325_v37  ;;  %v372_v38 = vsub.f32 %v2011_v16, %v2029_v30  ;;  %v2059_v55 = vand.u32 4294901760, %v2042_v41  ;;  %v2068_v62 = vsub.f32 %v216_v44, %v2056_v54  ;;  %v173_v44 = vld [vmem:[%s1867_s16 + $0x38] sm:$0xff] }
  0x21   : > { %482 = vmatpush.xpose.msra.mxu3 %v1902_v20  ;;  %v367_v37 = vand.u32 4294901760, %v366_v27  ;;  %v378_v48 = vsub.f32 %v2021_v23, %v2036_v36  ;;  %v660_v13 = vsel %vm205_vm0, %v173_v44, 0 }
  0x22   : > { %428 = vmatpush.xpose.msra.mxu2 %v1927_v32  ;;  %v384_v59 = vsub.f32 %v2042_v41, %v2059_v55  ;;  %v2084_v11 = vand.u32 4294901760, %v2068_v62  ;;  %v2120_v14 = vand.u32 4294901760, %v660_v13 }
  0x24   : > { %271 = vmatpush.xpose.msra.mxu0 %v1919_v28  ;;  %332 = vmatpush.xpose.msra.mxu1 %v331_v43  ;;  %v2044_v43 = vand.u32 4294901760, %v219_v31  ;;  %v385_v4 = vand.u32 4294901760, %v384_v59  ;;  %v396_v22 = vsub.f32 %v2068_v62, %v2084_v11 }
  0x25   : > { %484 = vmatpush.xpose.msra.mxu3 %v1919_v28 }
  0x26   : > { %431 = vmatpush.xpose.msra.mxu2 %v1941_v39  ;;  %v2054_v51 = vsub.f32 %v219_v31, %v2044_v43  ;;  %v397_v31 = vand.u32 4294901760, %v396_v22  ;;  %v651_v39 = vsel %vm205_vm0, %v170_v47, 0 }
  0x27   : > { %v2172_v22 = vand.u32 4294901760, %v651_v39 }
  0x28   : > { %273 = vmatpush.xpose.msra.mxu0 %v1933_v35  ;;  %338 = vmatpush.xpose.msra.mxu1 %v337_v50  ;;  %v373_v50 = vand.u32 4294901760, %v372_v38 }
  0x29   : > { %486 = vmatpush.xpose.msra.mxu3 %v1933_v35 }
  0x2a   : > { %434 = vmatpush.xpose.msra.mxu2 %v1954_v45 }
  0x2c   : > { %275 = vmatpush.xpose.msra.mxu0 %v1947_v42  ;;  %344 = vmatpush.xpose.msra.mxu1 %v343_v58  ;;  %v379_v58 = vand.u32 4294901760, %v378_v48 }
  0x2d   : > { %488 = vmatpush.xpose.msra.mxu3 %v1947_v42 }
  0x2e   : > { %437 = vmatpush.xpose.msra.mxu2 %v1962_v49  ;;  %v167_v49 = vld [vmem:[%s1867_s16 + $0x8] sm:$0xff] }
  0x2f   : > { %v642_v47 = vsel %vm205_vm0, %v167_v49, 0 }
  0x30   : > { %277 = vmatpush.xpose.msra.mxu0 %v1968_v52  ;;  %350 = vmatpush.xpose.msra.mxu1 %v349_v1  ;;  %v2073_v1 = vand.u32 4294901760, %v2054_v51 }
  0x31   : > { %490 = vmatpush.xpose.msra.mxu3 %v1968_v52 }
  0x32   : > { %440 = vmatpush.xpose.msra.mxu2 %v1982_v60  ;;  %v390_v5 = vsub.f32 %v2054_v51, %v2073_v1 }
  0x34   : > { %279 = vmatpush.xpose.msra.mxu0 %v1984_v61  ;;  %356 = vmatpush.xpose.msra.mxu1 %v355_v7  ;;  %v2081_v7 = vsub.f32 %v213_v57, %v2070_v63  ;;  %v391_v21 = vand.u32 4294901760, %v390_v5  ;;  %v1703_v57 = vld [vmem:[%s2641_s1 + $0x18] sm:$0x1] }
  0x35   : > { %492 = vmatpush.xpose.msra.mxu3 %v1984_v61 }
  0x36   : > { %443 = vmatpush.xpose.msra.mxu2 %v1996_v2  ;;  %v2092_v27 = vand.u32 4294901760, %v2081_v7 }
  0x38   : > { %281 = vmatpush.xpose.msra.mxu0 %v1992_v0  ;;  %362 = vmatpush.xpose.msra.mxu1 %v361_v26  ;;  %v402_v34 = vsub.f32 %v2081_v7, %v2092_v27 }
  0x39   : > { %494 = vmatpush.xpose.msra.mxu3 %v1992_v0 }
  0x3a   : > { %446 = vmatpush.xpose.msra.mxu2 %v2011_v16  ;;  %v2104_v38 = vand.u32 4294901760, %v402_v34 }
  0x3c   : > { %283 = vmatpush.xpose.msra.mxu0 %v2005_v6  ;;  %368 = vmatpush.xpose.msra.mxu1 %v367_v37 }
  0x3d   : > { %496 = vmatpush.xpose.msra.mxu3 %v2005_v6 }
  0x3e   : > { %449 = vmatpush.xpose.msra.mxu2 %v2021_v23 }
  0x40   : > { %285 = vmatpush.xpose.msra.mxu0 %v2026_v29  ;;  %374 = vmatpush.xpose.msra.mxu1 %v373_v50 }
  0x41   : > { %498 = vmatpush.xpose.msra.mxu3 %v2026_v29 }
  0x42   : > { %452 = vmatpush.xpose.msra.mxu2 %v2042_v41 }
  0x44   : > { %287 = vmatpush.xpose.msra.mxu0 %v2044_v43  ;;  %380 = vmatpush.xpose.msra.mxu1 %v379_v58 }
  0x45   : > { %500 = vmatpush.xpose.msra.mxu3 %v2044_v43 }
  0x46   : > { %455 = vmatpush.xpose.msra.mxu2 %v2054_v51 }
  0x48   : > { %289 = vmatpush.xpose.msra.mxu0 %v2056_v54  ;;  %386 = vmatpush.xpose.msra.mxu1 %v385_v4 }
  0x49   : > { %502 = vmatpush.xpose.msra.mxu3 %v2056_v54 }
  0x4a   : > { %458 = vmatpush.xpose.msra.mxu2 %v2068_v62 }
  0x4c   : > { %291 = vmatpush.xpose.msra.mxu0 %v2070_v63  ;;  %392 = vmatpush.xpose.msra.mxu1 %v391_v21 }
  0x4d   : > { %504 = vmatpush.xpose.msra.mxu3 %v2070_v63 }
  0x4e   : > { %461 = vmatpush.xpose.msra.mxu2 %v2081_v7 }
  0x50   : > { %521 = vmatpush.xpose.msrb.mxu0 %v311_v18  ;;  %398 = vmatpush.xpose.msra.mxu1 %v397_v31  ;;  %v172_v18 = vld [vmem:[%s1867_s16 + $0x30] sm:$0xff] }
  0x51   : > { %740 = vmatpush.xpose.msrb.mxu3 %v361_v26  ;;  %v657_v15 = vsel %vm205_vm0, %v172_v18, 0 }
  0x52   : > { %687 = vmatpush.xpose.msrb.mxu2 %v1968_v52  ;;  %v2137_v24 = vand.u32 4294901760, %v657_v15 }
  0x54   : > { %525 = vmatpush.xpose.msrb.mxu0 %v317_v19  ;;  %404 = vmatpush.xpose.msra.mxu1 %v2104_v38 }
  0x55   : > { %746 = vmatpush.xpose.msrb.mxu3 %v367_v37 }
  0x56   : > { %689 = vmatpush.xpose.msrb.mxu2 %v1984_v61 }
  0x58   : > { %529 = vmatpush.xpose.msrb.mxu0 %v323_v25  ;;  %592 = vmatpush.xpose.msrb.mxu1 %v1877_v8  ;;  %v1702_v8 = vld [vmem:[%s2641_s1 + $0x10] sm:$0xff]  ;;  %v171_v25 = vld [vmem:[%s1867_s16 + $0x28] sm:$0xff] }
  0x59   : > { %752 = vmatpush.xpose.msrb.mxu3 %v373_v50  ;;  %v207_v19 = vsel %vm205_vm0, %v1702_v8, 0  ;;  %v654_v37 = vsel %vm205_vm0, %v171_v25, 0 }
  0x5a   : > { %691 = vmatpush.xpose.msrb.mxu2 %v1992_v0  ;;  %v2129_v26 = vand.u32 4294901760, %v207_v19  ;;  %v2151_v48 = vand.u32 4294901760, %v654_v37 }
  0x5c   : > { %533 = vmatpush.xpose.msrb.mxu0 %v329_v33  ;;  %594 = vmatpush.xpose.msrb.mxu1 %v1879_v9  ;;  %v2135_v9 = vsub.f32 %v660_v13, %v2120_v14  ;;  %v293_v33 = vsub.f32 %v207_v19, %v2129_v26 }
  0x5d   : > { %758 = vmatpush.xpose.msrb.mxu3 %v379_v58  ;;  %406 = vmatmul.f32.vlgmr.msra.gmra.mxu1 %v2129_v26 }
  0x5e   : > { %693 = vmatpush.xpose.msrb.mxu2 %v2005_v6  ;;  %v294_v32 = vand.u32 4294901760, %v293_v33 }
  0x5f   : > { %464 = vmatmul.f32.vlgmr.msra.gmra.mxu2 %v293_v33 }
  0x60   : > { %537 = vmatpush.xpose.msrb.mxu0 %v335_v40  ;;  %596 = vmatpush.xpose.msrb.mxu1 %v1881_v10  ;;  %v785_v10 = vand.u32 4294901760, %v2135_v9  ;;  %v2149_v40 = vsub.f32 %v657_v15, %v2137_v24  ;;  %v295_v50 = vsub.f32 %v293_v33, %v294_v32  ;;  %v2190_v15 = vsub.f32 %v651_v39, %v2172_v22 }
  0x61   : > { %764 = vmatpush.xpose.msrb.mxu3 %v385_v4 }
  0x62   : > { %695 = vmatpush.xpose.msrb.mxu2 %v2026_v29  ;;  %508 = vmatmul.f32.vlgmr.msra.gmra.mxu3 %v294_v32  ;;  %v296_v58 = vand.u32 4294901760, %v295_v50  ;;  %v786_v4 = vsub.f32 %v2135_v9, %v785_v10  ;;  %v791_v5 = vand.u32 4294901760, %v2149_v40  ;;  %v803_v33 = vand.u32 4294901760, %v2190_v15  ;;  %v166_v32 = vld [vmem:[%s1867_s16] sm:$0xff] }
  0x64   : > { %541 = vmatpush.xpose.msrb.mxu0 %v341_v46  ;;  %598 = vmatpush.xpose.msrb.mxu1 %v1884_v12  ;;  %v169_v46 = vld [vmem:[%s1867_s16 + $0x18] sm:$0xff]  ;;  %v210_v12 = vsel %vm205_vm0, %v1703_v57, 0  ;;  %v792_v13 = vsub.f32 %v2149_v40, %v791_v5  ;;  %v804_v57 = vsub.f32 %v2190_v15, %v803_v33 }
  0x65   : > { %770 = vmatpush.xpose.msrb.mxu3 %v391_v21  ;;  %v2160_v59 = vand.u32 4294901760, %v210_v12  ;;  %v2170_v21 = vsub.f32 %v654_v37, %v2151_v48  ;;  %v648_v34 = vsel %vm205_vm0, %v169_v46, 0  ;;  %297 = vmatmul.f32.vlgmr.msra.gmra.mxu0 %v296_v58  ;;  %v2218_v46 = vand.u32 4294901760, %v642_v47 }
  0x66   : > { %697 = vmatpush.xpose.msrb.mxu2 %v2044_v43  ;;  %v2182_v44 = vand.u32 4294901760, %v648_v34  ;;  %v793_v19 = vand.u32 4294901760, %v792_v13 }
  0x67   : > { %v301_v45 = vsub.f32 %v210_v12, %v2160_v59  ;;  %410 = vmatmul.f32.gmra.mxu1 %v2160_v59  ;;  %v797_v18 = vand.u32 4294901760, %v2170_v21  ;;  %v639_v12 = vsel %vm205_vm0, %v166_v32, 0 }
  0x68   : > { %545 = vmatpush.xpose.msrb.mxu0 %v347_v53  ;;  %600 = vmatpush.xpose.msrb.mxu1 %v1902_v20  ;;  %v168_v20 = vld [vmem:[%s1867_s16 + $0x10] sm:$0xff] }
  0x69   : > { %776 = vmatpush.xpose.msrb.mxu3 %v397_v31  ;;  %469 = vmatmul.f32.gmra.mxu2 %v301_v45  ;;  %v302_v53 = vand.u32 4294901760, %v301_v45  ;;  %v787_v31 = vand.u32 4294901760, %v786_v4  ;;  %v798_v25 = vsub.f32 %v2170_v21, %v797_v18  ;;  %v805_v4 = vand.u32 4294901760, %v804_v57 }
  0x6a   : > { %699 = vmatpush.xpose.msrb.mxu2 %v2056_v54 }
  0x6b   : > { %v303_v8 = vsub.f32 %v301_v45, %v302_v53  ;;  %514 = vmatmul.f32.gmra.mxu3 %v302_v53  ;;  %v799_v50 = vand.u32 4294901760, %v798_v25  ;;  %v2232_v45 = vsub.f32 %v642_v47, %v2218_v46 }
  0x6c   : > { %549 = vmatpush.xpose.msrb.mxu0 %v353_v56  ;;  %602 = vmatpush.xpose.msrb.mxu1 %v1919_v28  ;;  %v645_v28 = vsel %vm205_vm0, %v168_v20, 0  ;;  %v2234_v20 = vand.u32 4294901760, %v639_v12 }
  0x6d   : > { %782 = vmatpush.xpose.msrb.mxu3 %v2104_v38  ;;  %v304_v56 = vand.u32 4294901760, %v303_v8  ;;  %v2198_v38 = vsub.f32 %v648_v34, %v2182_v44  ;;  %v2204_v37 = vand.u32 4294901760, %v645_v28  ;;  %v821_v8 = vand.u32 4294901760, %v2232_v45 }
  0x6e   : > { %701 = vmatpush.xpose.msrb.mxu2 %v2070_v63 }
  0x6f   : > { %305 = vmatmul.f32.gmra.mxu0 %v304_v56  ;;  %v2216_v39 = vsub.f32 %v645_v28, %v2204_v37  ;;  %v2245_v28 = vsub.f32 %v639_v12, %v2234_v20 }
  0x70   : > { %553 = vmatpush.xpose.msrb.mxu0 %v1999_v3  ;;  %604 = vmatpush.xpose.msrb.mxu1 %v1933_v35  ;;  %v809_v35 = vand.u32 4294901760, %v2198_v38 }
  0x71   : > { %788 = vmatpush.xpose.msrb.mxu3 %v787_v31  ;;  %v815_v34 = vand.u32 4294901760, %v2216_v39  ;;  %v827_v25 = vand.u32 4294901760, %v2245_v28 }
  0x72   : > { %703 = vmatpush.xpose.msrb.mxu2 %v2120_v14  ;;  %v810_v58 = vsub.f32 %v2198_v38, %v809_v35 }
  0x73   : > { %v816_v13 = vsub.f32 %v2216_v39, %v815_v34 }
  0x74   : > { %557 = vmatpush.xpose.msrb.mxu0 %v2014_v17  ;;  %606 = vmatpush.xpose.msrb.mxu1 %v1947_v42  ;;  %v182_v42 = vld [vmem:[%s2641_s1] sm:$0xff]  ;;  %v811_v31 = vand.u32 4294901760, %v810_v58 }
  0x75   : > { %794 = vmatpush.xpose.msrb.mxu3 %v793_v19  ;;  %v633_v53 = vsel %vm205_vm0, %v182_v42, 0  ;;  %v817_v56 = vand.u32 4294901760, %v816_v13  ;;  %v822_v19 = vsub.f32 %v2232_v45, %v821_v8 }
  0x76   : > { %705 = vmatpush.xpose.msrb.mxu2 %v2137_v24  ;;  %v2247_v49 = vand.u32 4294901760, %v633_v53 }
  0x77   : > { %v823_v32 = vand.u32 4294901760, %v822_v19  ;;  %v1711_v19 = vld [vmem:[%s1867_s16 + $0xb0] sm:$0xff] }
  0x78   : > { %561 = vmatpush.xpose.msrb.mxu0 %v2029_v30  ;;  %608 = vmatpush.xpose.msrb.mxu1 %v1968_v52  ;;  %v2257_v47 = vsub.f32 %v633_v53, %v2247_v49  ;;  %v1712_v53 = vld [vmem:[%s1867_s16 + $0xb8] sm:$0xff] }
  0x79   : > { %800 = vmatpush.xpose.msrb.mxu3 %v799_v50  ;;  %v828_v50 = vsub.f32 %v2245_v28, %v827_v25 }
  0x7a   : > { %707 = vmatpush.xpose.msrb.mxu2 %v2151_v48  ;;  %v720_v57 = vand.u32 4294901760, %v2257_v47 }
  0x7b   : > { %v829_v12 = vand.u32 4294901760, %v828_v50 }
  0x7c   : > { %565 = vmatpush.xpose.msrb.mxu0 %v2036_v36  ;;  %610 = vmatpush.xpose.msrb.mxu1 %v1984_v61  ;;  %v721_v42 = vsub.f32 %v2257_v47, %v720_v57 }
  0x7d   : > { %806 = vmatpush.xpose.msrb.mxu3 %v805_v4 }
  0x7e   : > { %709 = vmatpush.xpose.msrb.mxu2 %v2172_v22  ;;  %v722_v58 = vand.u32 4294901760, %v721_v42  ;;  %v1710_v42 = vld [vmem:[%s1867_s16 + $0xa8] sm:$0xff] }
  0x80   : > { %569 = vmatpush.xpose.msrb.mxu0 %v2059_v55  ;;  %612 = vmatpush.xpose.msrb.mxu1 %v1992_v0 }
  0x81   : > { %812 = vmatpush.xpose.msrb.mxu3 %v811_v31 }
  0x82   : > { %711 = vmatpush.xpose.msrb.mxu2 %v2182_v44 }
  0x84   : > { %573 = vmatpush.xpose.msrb.mxu0 %v2073_v1  ;;  %614 = vmatpush.xpose.msrb.mxu1 %v2005_v6 }
  0x85   : > { %818 = vmatpush.xpose.msrb.mxu3 %v817_v56  ;;  %v1107_v56 = vsel %vm205_vm0, %v1712_v53, 0 }
  0x86   : > { %713 = vmatpush.xpose.msrb.mxu2 %v2204_v37 }
  0x88   : > { %577 = vmatpush.xpose.msrb.mxu0 %v2084_v11  ;;  %616 = vmatpush.xpose.msrb.mxu1 %v2026_v29 }
  0x89   : > { %824 = vmatpush.xpose.msrb.mxu3 %v823_v32 }
  0x8a   : > { %715 = vmatpush.xpose.msrb.mxu2 %v2218_v46 }
  0x8c   : > { %581 = vmatpush.xpose.msrb.mxu0 %v2092_v27  ;;  %618 = vmatpush.xpose.msrb.mxu1 %v2044_v43 }
  0x8d   : > { %830 = vmatpush.xpose.msrb.mxu3 %v829_v12  ;;  %v1104_v12 = vsel %vm205_vm0, %v1711_v19, 0 }
  0x8e   : > { %717 = vmatpush.xpose.msrb.mxu2 %v2234_v20 }
  0x8f   : > { %583 = vmatmul.f32.vlgmr.msrb.gmra.mxu0 %v2129_v26 }
  0x90   : > { %842 = vmatpush.xpose.msra.mxu0 %v1982_v60  ;;  %620 = vmatpush.xpose.msrb.mxu1 %v2056_v54 }
  0x91   : > { %1018 = vmatpush.xpose.msra.mxu3 %v1968_v52  ;;  %723 = vmatmul.f32.vlgmr.msrb.gmra.mxu2 %v722_v58 }
  0x92   : > { %947 = vmatpush.xpose.msra.mxu2 %v1999_v3  ;;  %832 = vmatmul.f32.vlgmr.msrb.gmra.mxu3 %v2247_v49 }
  0x94   : > { %845 = vmatpush.xpose.msra.mxu0 %v1996_v2  ;;  %622 = vmatpush.xpose.msrb.mxu1 %v2070_v63 }
  0x95   : > { %1020 = vmatpush.xpose.msra.mxu3 %v1984_v61 }
  0x96   : > { %951 = vmatpush.xpose.msra.mxu2 %v2014_v17 }
  0x97   : > { %624 = vmatmul.f32.vlgmr.msrb.gmra.mxu1 %v2129_v26  ;;  %587 = vmatmul.f32.gmra.mxu0 %v2160_v59 }
  0x98   : > { %848 = vmatpush.xpose.msra.mxu0 %v2011_v16  ;;  %900 = vmatpush.xpose.msra.mxu1 %v1968_v52  ;;  %v183_v52 = vld [vmem:[%s2641_s1 + $0x8] sm:$0x1] }
  0x99   : > { %1022 = vmatpush.xpose.msra.mxu3 %v1992_v0  ;;  %v636_v60 = vsel %vm205_vm0, %v183_v52, 0 }
  0x9a   : > { %955 = vmatpush.xpose.msra.mxu2 %v2029_v30  ;;  %v2303_v2 = vand.u32 4294901760, %v636_v60 }
  0x9c   : > { %851 = vmatpush.xpose.msra.mxu0 %v2021_v23  ;;  %902 = vmatpush.xpose.msra.mxu1 %v1984_v61  ;;  %v2308_v61 = vsub.f32 %v636_v60, %v2303_v2  ;;  %v1719_v23 = vld [vmem:[%s1867_s16 + $0xf0] sm:$0xff] }
  0x9d   : > { %1024 = vmatpush.xpose.msra.mxu3 %v2005_v6  ;;  %v1128_v30 = vsel %vm205_vm0, %v1719_v23, 0 }
  0x9e   : > { %959 = vmatpush.xpose.msra.mxu2 %v2036_v36  ;;  %836 = vmatmul.f32.gmra.mxu3 %v2303_v2  ;;  %v1718_v36 = vld [vmem:[%s1867_s16 + $0xe8] sm:$0xff] }
  0x9f   : > { %628 = vmatmul.f32.gmra.mxu1 %v2160_v59 }
  0xa0   : > { %854 = vmatpush.xpose.msra.mxu0 %v2042_v41  ;;  %904 = vmatpush.xpose.msra.mxu1 %v1992_v0  ;;  %v728_v0 = vand.u32 4294901760, %v2308_v61  ;;  %v2361_v41 = vand.u32 4294901760, %v1128_v30 }
  0xa1   : > { %1026 = vmatpush.xpose.msra.mxu3 %v2026_v29 }
  0xa2   : > { %963 = vmatpush.xpose.msra.mxu2 %v2059_v55  ;;  %v729_v3 = vsub.f32 %v2308_v61, %v728_v0  ;;  %v1189_v55 = vsub.f32 %v1128_v30, %v2361_v41 }
  0xa4   : > { %857 = vmatpush.xpose.msra.mxu0 %v2054_v51  ;;  %906 = vmatpush.xpose.msra.mxu1 %v2005_v6  ;;  %v730_v16 = vand.u32 4294901760, %v729_v3  ;;  %v1720_v6 = vld [vmem:[%s1867_s16 + $0xf8] sm:$0xff]  ;;  %v1125_v51 = vsel %vm205_vm0, %v1718_v36, 0  ;;  %v1709_v3 = vld [vmem:[%s1867_s16 + $0xa0] sm:$0xff] }
  0xa5   : > { %1028 = vmatpush.xpose.msra.mxu3 %v2044_v43  ;;  %v1131_v17 = vsel %vm205_vm0, %v1720_v6, 0  ;;  %v1098_v36 = vsel %vm205_vm0, %v1709_v3, 0 }
  0xa6   : > { %967 = vmatpush.xpose.msra.mxu2 %v2073_v1 }
  0xa7   : > { %731 = vmatmul.f32.gmra.mxu2 %v730_v16 }
  0xa8   : > { %860 = vmatpush.xpose.msra.mxu0 %v2068_v62  ;;  %908 = vmatpush.xpose.msra.mxu1 %v2026_v29  ;;  %v2353_v29 = vand.u32 4294901760, %v1131_v17  ;;  %v2372_v62 = vand.u32 4294901760, %v1125_v51 }
  0xa9   : > { %1030 = vmatpush.xpose.msra.mxu3 %v2056_v54 }
  0xaa   : > { %971 = vmatpush.xpose.msra.mxu2 %v2084_v11  ;;  %v2383_v11 = vand.u32 4294901760, %v1189_v55 }
  0xac   : > { %863 = vmatpush.xpose.msra.mxu0 %v2081_v7  ;;  %910 = vmatpush.xpose.msra.mxu1 %v2044_v43  ;;  %v1183_v43 = vsub.f32 %v1131_v17, %v2353_v29  ;;  %v1716_v7 = vld [vmem:[%s1867_s16 + $0xd8] sm:$0xff] }
  0xad   : > { %1032 = vmatpush.xpose.msra.mxu3 %v2070_v63 }
  0xae   : > { %975 = vmatpush.xpose.msra.mxu2 %v2092_v27  ;;  %v1195_v27 = vsub.f32 %v1125_v51, %v2372_v62  ;;  %v2478_v51 = vand.u32 4294901760, %v1098_v36 }
  0xb0   : > { %866 = vmatpush.xpose.msra.mxu0 %v2135_v9  ;;  %912 = vmatpush.xpose.msra.mxu1 %v2056_v54  ;;  %v1717_v54 = vld [vmem:[%s1867_s16 + $0xe0] sm:$0xff]  ;;  %v1119_v9 = vsel %vm205_vm0, %v1716_v7, 0 }
  0xb1   : > { %1034 = vmatpush.xpose.msra.mxu3 %v2120_v14  ;;  %v1122_v1 = vsel %vm205_vm0, %v1717_v54, 0 }
  0xb2   : > { %979 = vmatpush.xpose.msra.mxu2 %v785_v10  ;;  %v2389_v26 = vand.u32 4294901760, %v1122_v1  ;;  %v2399_v10 = vand.u32 4294901760, %v1195_v27 }
  0xb4   : > { %869 = vmatpush.xpose.msra.mxu0 %v2149_v40  ;;  %914 = vmatpush.xpose.msra.mxu1 %v2070_v63  ;;  %v2375_v63 = vand.u32 4294901760, %v1183_v43  ;;  %v1191_v40 = vsub.f32 %v1189_v55, %v2383_v11  ;;  %v1201_v59 = vsub.f32 %v1122_v1, %v2389_v26 }
  0xb5   : > { %1036 = vmatpush.xpose.msra.mxu3 %v2137_v24 }
  0xb6   : > { %983 = vmatpush.xpose.msra.mxu2 %v791_v5  ;;  %v2405_v5 = vand.u32 4294901760, %v1119_v9 }
  0xb8   : > { %872 = vmatpush.xpose.msra.mxu0 %v2170_v21  ;;  %916 = vmatpush.xpose.msra.mxu1 %v2120_v14  ;;  %v1185_v14 = vsub.f32 %v1183_v43, %v2375_v63 }
  0xb9   : > { %1038 = vmatpush.xpose.msra.mxu3 %v2151_v48 }
  0xba   : > { %987 = vmatpush.xpose.msra.mxu2 %v797_v18  ;;  %v1197_v18 = vsub.f32 %v1195_v27, %v2399_v10 }
  0xbc   : > { %875 = vmatpush.xpose.msra.mxu0 %v2190_v15  ;;  %918 = vmatpush.xpose.msra.mxu1 %v2137_v24  ;;  %v1715_v24 = vld [vmem:[%s1867_s16 + $0xd0] sm:$0xff]  ;;  %v2413_v15 = vand.u32 4294901760, %v1201_v59 }
  0xbd   : > { %1040 = vmatpush.xpose.msra.mxu3 %v2172_v22  ;;  %v1116_v21 = vsel %vm205_vm0, %v1715_v24, 0 }
  0xbe   : > { %991 = vmatpush.xpose.msra.mxu2 %v803_v33  ;;  %v2416_v33 = vand.u32 4294901760, %v1116_v21 }
  0xc0   : > { %878 = vmatpush.xpose.msra.mxu0 %v2198_v38  ;;  %920 = vmatpush.xpose.msra.mxu1 %v2151_v48  ;;  %v1186_v48 = vand.u32 4294901760, %v1185_v14  ;;  %v1207_v38 = vsub.f32 %v1119_v9, %v2405_v5  ;;  %v1707_v14 = vld [vmem:[%s1867_s16 + $0x90] sm:$0xff]  ;;  %v1249_v9 = vsub.f32 %v1098_v36, %v2478_v51  ;;  %v1721_v36 = vld [vmem:[%s2641_s1 + $0x20] sm:$0xff] }
  0xc1   : > { %1042 = vmatpush.xpose.msra.mxu3 %v2182_v44 }
  0xc2   : > { %995 = vmatpush.xpose.msra.mxu2 %v809_v35  ;;  %v1713_v35 = vld [vmem:[%s1867_s16 + $0xc0] sm:$0xff]  ;;  %v2428_v4 = vand.u32 4294901760, %v1207_v38 }
  0xc4   : > { %881 = vmatpush.xpose.msra.mxu0 %v2216_v39  ;;  %922 = vmatpush.xpose.msra.mxu1 %v2172_v22  ;;  %v1714_v22 = vld [vmem:[%s1867_s16 + $0xc8] sm:$0xff]  ;;  %v1198_v39 = vand.u32 4294901760, %v1197_v18 }
  0xc5   : > { %1044 = vmatpush.xpose.msra.mxu3 %v2204_v37 }
  0xc6   : > { %999 = vmatpush.xpose.msra.mxu2 %v815_v34  ;;  %v1203_v34 = vsub.f32 %v1201_v59, %v2413_v15 }
  0xc8   : > { %884 = vmatpush.xpose.msra.mxu0 %v2232_v45  ;;  %924 = vmatpush.xpose.msra.mxu1 %v2182_v44  ;;  %v1192_v44 = vand.u32 4294901760, %v1191_v40  ;;  %v1213_v45 = vsub.f32 %v1116_v21, %v2416_v33  ;;  %v1092_v21 = vsel %vm205_vm0, %v1707_v14, 0 }
  0xc9   : > { %1046 = vmatpush.xpose.msra.mxu3 %v2218_v46 }
  0xca   : > { %1003 = vmatpush.xpose.msra.mxu2 %v821_v8  ;;  %v1204_v8 = vand.u32 4294901760, %v1203_v34  ;;  %v1705_v34 = vld [vmem:[%s1867_s16 + $0x80] sm:$0xff] }
  0xcc   : > { %887 = vmatpush.xpose.msra.mxu0 %v2245_v28  ;;  %926 = vmatpush.xpose.msra.mxu1 %v2204_v37  ;;  %v1113_v37 = vsel %vm205_vm0, %v1714_v22, 0  ;;  %v2440_v28 = vand.u32 4294901760, %v1213_v45  ;;  %v1706_v22 = vld [vmem:[%s1867_s16 + $0x88] sm:$0xff] }
  0xcd   : > { %1048 = vmatpush.xpose.msra.mxu3 %v2234_v20 }
  0xce   : > { %1007 = vmatpush.xpose.msra.mxu2 %v827_v25  ;;  %v1215_v50 = vsub.f32 %v1213_v45, %v2440_v28 }
  0xcf   : > { %890 = vmatmul.f32.vlgmr.msra.gmra.mxu0 %v2257_v47 }
  0xd0   : > { %1134 = vmatpush.xpose.msrb.mxu0 %v2353_v29  ;;  %928 = vmatpush.xpose.msra.mxu1 %v2218_v46  ;;  %v2425_v46 = vand.u32 4294901760, %v1113_v37  ;;  %v1216_v60 = vand.u32 4294901760, %v1215_v50 }
  0xd1   : > { %1347 = vmatpush.xpose.msrb.mxu3 %v2353_v29  ;;  %1009 = vmatmul.f32.vlgmr.msra.gmra.mxu2 %v2247_v49 }
  0xd2   : > { %1289 = vmatpush.xpose.msrb.mxu2 %v1183_v43  ;;  %1050 = vmatmul.f32.vlgmr.msra.gmra.mxu3 %v2247_v49  ;;  %v1219_v31 = vsub.f32 %v1113_v37, %v2425_v46  ;;  %v1209_v49 = vsub.f32 %v1207_v38, %v2428_v4  ;;  %v1708_v43 = vld [vmem:[%s1867_s16 + $0x98] sm:$0xff] }
  0xd4   : > { %1136 = vmatpush.xpose.msrb.mxu0 %v2361_v41  ;;  %930 = vmatpush.xpose.msra.mxu1 %v2234_v20  ;;  %v1110_v20 = vsel %vm205_vm0, %v1713_v35, 0  ;;  %v2448_v25 = vand.u32 4294901760, %v1219_v31  ;;  %v1210_v32 = vand.u32 4294901760, %v1209_v49  ;;  %v2503_v35 = vand.u32 4294901760, %v1092_v21 }
  0xd5   : > { %1349 = vmatpush.xpose.msrb.mxu3 %v2361_v41  ;;  %v2437_v13 = vand.u32 4294901760, %v1110_v20  ;;  %v1086_v49 = vsel %vm205_vm0, %v1705_v34, 0 }
  0xd6   : > { %1292 = vmatpush.xpose.msrb.mxu2 %v1189_v55  ;;  %v1221_v52 = vsub.f32 %v1219_v31, %v2448_v25  ;;  %v2522_v50 = vand.u32 4294901760, %v1086_v49 }
  0xd7   : > { %934 = vmatmul.f32.vlgmr.msra.gmra.mxu1 %v720_v57  ;;  %895 = vmatmul.f32.gmra.mxu0 %v2308_v61  ;;  %v1225_v47 = vsub.f32 %v1110_v20, %v2437_v13  ;;  %v2453_v57 = vand.u32 4294901760, %v1107_v56  ;;  %v2463_v61 = vand.u32 4294901760, %v1104_v12 }
  0xd8   : > { %1138 = vmatpush.xpose.msrb.mxu0 %v2372_v62  ;;  %1187 = vmatpush.xpose.msrb.mxu1 %v1186_v48  ;;  %v1222_v16 = vand.u32 4294901760, %v1221_v52 }
  0xd9   : > { %1351 = vmatpush.xpose.msrb.mxu3 %v2372_v62  ;;  %1013 = vmatmul.f32.gmra.mxu2 %v2303_v2  ;;  %v2458_v58 = vand.u32 4294901760, %v1225_v47  ;;  %v1237_v23 = vsub.f32 %v1104_v12, %v2463_v61 }
  0xda   : > { %1295 = vmatpush.xpose.msrb.mxu2 %v1195_v27  ;;  %1054 = vmatmul.f32.gmra.mxu3 %v2303_v2  ;;  %v1231_v2 = vsub.f32 %v1107_v56, %v2453_v57  ;;  %v1095_v27 = vsel %vm205_vm0, %v1708_v43, 0  ;;  %v1080_v43 = vsel %vm205_vm0, %v1721_v36, 0 }
  0xdb   : > { %v1227_v6 = vsub.f32 %v1225_v47, %v2458_v58  ;;  %v2481_v55 = vand.u32 4294901760, %v1237_v23 }
  0xdc   : > { %1140 = vmatpush.xpose.msrb.mxu0 %v2389_v26  ;;  %1193 = vmatpush.xpose.msrb.mxu1 %v1192_v44  ;;  %v2470_v17 = vand.u32 4294901760, %v1231_v2  ;;  %v2498_v44 = vand.u32 4294901760, %v1249_v9 }
  0xdd   : > { %1353 = vmatpush.xpose.msrb.mxu3 %v2389_v26  ;;  %v1228_v54 = vand.u32 4294901760, %v1227_v6  ;;  %v1239_v48 = vsub.f32 %v1237_v23, %v2481_v55 }
  0xde   : > { %1298 = vmatpush.xpose.msrb.mxu2 %v1201_v59  ;;  %v1233_v1 = vsub.f32 %v1231_v2, %v2470_v17  ;;  %v2493_v59 = vand.u32 4294901760, %v1095_v27 }
  0xdf   : > { %940 = vmatmul.f32.gmra.mxu1 %v728_v0  ;;  %v1101_v0 = vsel %vm205_vm0, %v1710_v42, 0  ;;  %v1240_v18 = vand.u32 4294901760, %v1239_v48 }
  0xe0   : > { %1142 = vmatpush.xpose.msrb.mxu0 %v2405_v5  ;;  %1199 = vmatpush.xpose.msrb.mxu1 %v1198_v39  ;;  %v2473_v30 = vand.u32 4294901760, %v1101_v0  ;;  %v1234_v24 = vand.u32 4294901760, %v1233_v1  ;;  %v1255_v37 = vsub.f32 %v1095_v27, %v2493_v59  ;;  %v1089_v39 = vsel %vm205_vm0, %v1706_v22, 0 }
  0xe1   : > { %1355 = vmatpush.xpose.msrb.mxu3 %v2405_v5 }
  0xe2   : > { %1301 = vmatpush.xpose.msrb.mxu2 %v1207_v38  ;;  %v1243_v7 = vsub.f32 %v1101_v0, %v2473_v30  ;;  %v2510_v53 = vand.u32 4294901760, %v1255_v37 }
  0xe4   : > { %1144 = vmatpush.xpose.msrb.mxu0 %v2416_v33  ;;  %1205 = vmatpush.xpose.msrb.mxu1 %v1204_v8  ;;  %v2490_v40 = vand.u32 4294901760, %v1243_v7  ;;  %v2513_v8 = vand.u32 4294901760, %v1089_v39 }
  0xe5   : > { %1357 = vmatpush.xpose.msrb.mxu3 %v2416_v33 }
  0xe6   : > { %1304 = vmatpush.xpose.msrb.mxu2 %v1213_v45  ;;  %v1245_v38 = vsub.f32 %v1243_v7, %v2490_v40  ;;  %v1251_v45 = vsub.f32 %v1249_v9, %v2498_v44 }
  0xe8   : > { %1146 = vmatpush.xpose.msrb.mxu0 %v2425_v46  ;;  %1211 = vmatpush.xpose.msrb.mxu1 %v1210_v32  ;;  %v1246_v20 = vand.u32 4294901760, %v1245_v38  ;;  %v1252_v56 = vand.u32 4294901760, %v1251_v45  ;;  %v1267_v32 = vsub.f32 %v1089_v39, %v2513_v8  ;;  %v1511_v45 = vstv %s1510_s29 }
  0xe9   : > { %1359 = vmatpush.xpose.msrb.mxu3 %v2425_v46 }
  0xea   : > { %1307 = vmatpush.xpose.msrb.mxu2 %v1219_v31  ;;  %v1261_v31 = vsub.f32 %v1092_v21, %v2503_v35  ;;  %v2526_v42 = vand.u32 4294901760, %v1267_v32 }
  0xec   : > { %1148 = vmatpush.xpose.msrb.mxu0 %v2437_v13  ;;  %1217 = vmatpush.xpose.msrb.mxu1 %v1216_v60  ;;  %v2518_v19 = vand.u32 4294901760, %v1261_v31  ;;  %v1273_v60 = vsub.f32 %v1086_v49, %v2522_v50  ;;  %v1269_v3 = vsub.f32 %v1267_v32, %v2526_v42 }
  0xed   : > { %1361 = vmatpush.xpose.msrb.mxu3 %v2437_v13 }
  0xee   : > { %1310 = vmatpush.xpose.msrb.mxu2 %v1225_v47  ;;  %v1257_v47 = vsub.f32 %v1255_v37, %v2510_v53  ;;  %v1263_v52 = vsub.f32 %v1261_v31, %v2518_v19  ;;  %v2532_v0 = vand.u32 4294901760, %v1273_v60 }
  0xf0   : > { %1150 = vmatpush.xpose.msrb.mxu0 %v2453_v57  ;;  %1223 = vmatpush.xpose.msrb.mxu1 %v1222_v16  ;;  %v1258_v12 = vand.u32 4294901760, %v1257_v47  ;;  %v1270_v16 = vand.u32 4294901760, %v1269_v3  ;;  %v1275_v6 = vsub.f32 %v1273_v60, %v2532_v0 }
  0xf1   : > { %1363 = vmatpush.xpose.msrb.mxu3 %v2453_v57 }
  0xf2   : > { %1313 = vmatpush.xpose.msrb.mxu2 %v1231_v2  ;;  %v1264_v2 = vand.u32 4294901760, %v1263_v52 }
  0xf4   : > { %1152 = vmatpush.xpose.msrb.mxu0 %v2463_v61  ;;  %1229 = vmatpush.xpose.msrb.mxu1 %v1228_v54  ;;  %v2548_v54 = vand.u32 4294901760, %v1080_v43 }
  0xf5   : > { %1365 = vmatpush.xpose.msrb.mxu3 %v2463_v61 }
  0xf6   : > { %1316 = vmatpush.xpose.msrb.mxu2 %v1237_v23  ;;  %v1276_v23 = vand.u32 4294901760, %v1275_v6  ;;  %v1166_v1 = vsub.f32 %v1080_v43, %v2548_v54 }
  0xf8   : > { %1154 = vmatpush.xpose.msrb.mxu0 %v2473_v30  ;;  %1235 = vmatpush.xpose.msrb.mxu1 %v1234_v24 }
  0xf9   : > { %1367 = vmatpush.xpose.msrb.mxu3 %v2473_v30 }
  0xfa   : > { %1319 = vmatpush.xpose.msrb.mxu2 %v1243_v7 }
  0xfc   : > { %1156 = vmatpush.xpose.msrb.mxu0 %v2478_v51  ;;  %1241 = vmatpush.xpose.msrb.mxu1 %v1240_v18 }
  0xfd   : > { %1369 = vmatpush.xpose.msrb.mxu3 %v2478_v51 }
  0xfe   : > { %1322 = vmatpush.xpose.msrb.mxu2 %v1249_v9 }
 0x100   : > { %1158 = vmatpush.xpose.msrb.mxu0 %v2493_v59  ;;  %1247 = vmatpush.xpose.msrb.mxu1 %v1246_v20 }
 0x101   : > { %1371 = vmatpush.xpose.msrb.mxu3 %v2493_v59 }
 0x102   : > { %1325 = vmatpush.xpose.msrb.mxu2 %v1255_v37 }
 0x104   : > { %1160 = vmatpush.xpose.msrb.mxu0 %v2503_v35  ;;  %1253 = vmatpush.xpose.msrb.mxu1 %v1252_v56 }
 0x105   : > { %1373 = vmatpush.xpose.msrb.mxu3 %v2503_v35 }
 0x106   : > { %1328 = vmatpush.xpose.msrb.mxu2 %v1261_v31 }
 0x108   : > { %1162 = vmatpush.xpose.msrb.mxu0 %v2513_v8  ;;  %1259 = vmatpush.xpose.msrb.mxu1 %v1258_v12 }
 0x109   : > { %1375 = vmatpush.xpose.msrb.mxu3 %v2513_v8 }
 0x10a   : > { %1331 = vmatpush.xpose.msrb.mxu2 %v1267_v32 }
 0x10c   : > { %1164 = vmatpush.xpose.msrb.mxu0 %v2522_v50  ;;  %1265 = vmatpush.xpose.msrb.mxu1 %v1264_v2 }
 0x10d   : > { %1377 = vmatpush.xpose.msrb.mxu3 %v2522_v50 }
 0x10e   : > { %1334 = vmatpush.xpose.msrb.mxu2 %v1273_v60 }
 0x110   : > { %1394 = vmatpush.xpose.msra.mxu0 %v2375_v63  ;;  %1271 = vmatpush.xpose.msrb.mxu1 %v1270_v16 }
 0x111   : > { %1742 = vmatpush.xpose.msra.mxu3 %v2353_v29  ;;  %1337 = vmatmul.f32.vlgmr.msrb.gmra.mxu2 %v1166_v1 }
 0x112   : > { %1726 = vmatpush.xpose.msra.mxu2 %v2375_v63  ;;  %v1167_v63 = vand.u32 4294901760, %v1166_v1 }
 0x114   : > { %1398 = vmatpush.xpose.msra.mxu0 %v2383_v11  ;;  %1277 = vmatpush.xpose.msrb.mxu1 %v1276_v23  ;;  %v1168_v7 = vsub.f32 %v1166_v1, %v1167_v63 }
 0x115   : > { %1743 = vmatpush.xpose.msra.mxu3 %v2361_v41 }
 0x116   : > { %1727 = vmatpush.xpose.msra.mxu2 %v2383_v11  ;;  %1381 = vmatmul.f32.vlgmr.msrb.gmra.mxu3 %v1167_v63  ;;  %v1722_v11 = vld [vmem:[%s2641_s1 + $0x28] sm:$0x1]  ;;  %v1169_v27 = vand.u32 4294901760, %v1168_v7 }
 0x117   : > { %1279 = vmatmul.f32.vlgmr.msrb.gmra.mxu1 %v2548_v54 }
 0x118   : > { %1402 = vmatpush.xpose.msra.mxu0 %v2399_v10  ;;  %1465 = vmatpush.xpose.msra.mxu1 %v2353_v29  ;;  %v1083_v29 = vsel %vm205_vm0, %v1722_v11, 0 }
 0x119   : > { %1744 = vmatpush.xpose.msra.mxu3 %v2372_v62  ;;  %v1173_v14 = vand.u32 4294901760, %v1083_v29  ;;  %1170 = vmatmul.f32.vlgmr.msrb.gmra.mxu0 %v1169_v27 }
 0x11a   : > { %1728 = vmatpush.xpose.msra.mxu2 %v2399_v10 }
 0x11b   : > { %v1174_v10 = vsub.f32 %v1083_v29, %v1173_v14 }
 0x11c   : > { %1406 = vmatpush.xpose.msra.mxu0 %v2413_v15  ;;  %1467 = vmatpush.xpose.msra.mxu1 %v2361_v41 }
 0x11d   : > { %1745 = vmatpush.xpose.msra.mxu3 %v2389_v26  ;;  %v1175_v9 = vand.u32 4294901760, %v1174_v10  ;;  %1342 = vmatmul.f32.gmra.mxu2 %v1174_v10 }
 0x11e   : > { %1729 = vmatpush.xpose.msra.mxu2 %v2413_v15 }
 0x11f   : > { %1283 = vmatmul.f32.gmra.mxu1 %v1173_v14  ;;  %v1176_v41 = vsub.f32 %v1174_v10, %v1175_v9  ;;  %1387 = vmatmul.f32.gmra.mxu3 %v1175_v9 }
 0x120   : > { %1410 = vmatpush.xpose.msra.mxu0 %v2428_v4  ;;  %1469 = vmatpush.xpose.msra.mxu1 %v2372_v62  ;;  %v298_v62 = vpop.f32.mrf.mxu0 }
 0x121   : > { %1746 = vmatpush.xpose.msra.mxu3 %v2405_v5  ;;  %v1177_v15 = vand.u32 4294901760, %v1176_v41 }
 0x122   : > { %1730 = vmatpush.xpose.msra.mxu2 %v2428_v4 }
 0x123   : > { %1178 = vmatmul.f32.gmra.mxu0 %v1177_v15 }
 0x124   : > { %1414 = vmatpush.xpose.msra.mxu0 %v2440_v28  ;;  %1471 = vmatpush.xpose.msra.mxu1 %v2389_v26  ;;  %v407_v26 = vpop.f32.mrf.mxu1 }
 0x125   : > { %1747 = vmatpush.xpose.msra.mxu3 %v2416_v33  ;;  %v408_v31 = vadd.f32 %v407_v26, %v298_v62 }
 0x126   : > { %1731 = vmatpush.xpose.msra.mxu2 %v2440_v28 }
 0x128   : > { %1418 = vmatpush.xpose.msra.mxu0 %v2448_v25  ;;  %1473 = vmatpush.xpose.msra.mxu1 %v2405_v5  ;;  %v509_v5 = vpop.f32.mrf.mxu3 }
 0x129   : > { %1748 = vmatpush.xpose.msra.mxu3 %v2425_v46 }
 0x12a   : > { %1732 = vmatpush.xpose.msra.mxu2 %v2448_v25  ;;  %v1824_v25 = vmov 64.0  }
 0x12b   : > { %1796 = vrcp.f32 %v1824_v25 }
 0x12c   : > { %1422 = vmatpush.xpose.msra.mxu0 %v2458_v58  ;;  %1475 = vmatpush.xpose.msra.mxu1 %v2416_v33  ;;  %v465_v33 = vpop.f32.mrf.mxu2  ;;  %v411_v4 = vpop.f32.mrf.mxu1 }
 0x12d   : > { %1749 = vmatpush.xpose.msra.mxu3 %v2437_v13  ;;  %v466_v47 = vadd.f32 %v465_v33, %v408_v31 }
 0x12e   : > { %1733 = vmatpush.xpose.msra.mxu2 %v2458_v58 }
 0x12f   : > { %v510_v2 = vadd.f32 %v509_v5, %v466_v47 }
 0x130   : > { %1426 = vmatpush.xpose.msra.mxu0 %v2470_v17  ;;  %1477 = vmatpush.xpose.msra.mxu1 %v2425_v46  ;;  %v306_v46 = vpop.f32.mrf.mxu0 }
 0x131   : > { %1750 = vmatpush.xpose.msra.mxu3 %v2453_v57 }
 0x132   : > { %1734 = vmatpush.xpose.msra.mxu2 %v2470_v17 }
 0x134   : > { %1430 = vmatpush.xpose.msra.mxu0 %v2481_v55  ;;  %1479 = vmatpush.xpose.msra.mxu1 %v2437_v13  ;;  %v515_v13 = vpop.f32.mrf.mxu3  ;;  %v470_v28 = vpop.f32.mrf.mxu2 }
 0x135   : > { %1751 = vmatpush.xpose.msra.mxu3 %v2463_v61  ;;  %v625_v58 = vpop.f32.mrf.mxu1 }
 0x136   : > { %1735 = vmatpush.xpose.msra.mxu2 %v2481_v55 }
 0x138   : > { %1434 = vmatpush.xpose.msra.mxu0 %v2490_v40  ;;  %1481 = vmatpush.xpose.msra.mxu1 %v2453_v57  ;;  %v584_v57 = vpop.f32.mrf.mxu0 }
 0x139   : > { %1752 = vmatpush.xpose.msra.mxu3 %v2473_v30  ;;  %v585_v23 = vadd.f32 %v584_v57, %v510_v2 }
 0x13a   : > { %1736 = vmatpush.xpose.msra.mxu2 %v2490_v40 }
 0x13b   : > { %v626_v11 = vadd.f32 %v625_v58, %v585_v23 }
 0x13c   : > { %1438 = vmatpush.xpose.msra.mxu0 %v2498_v44  ;;  %1483 = vmatpush.xpose.msra.mxu1 %v2463_v61  ;;  %v833_v61 = vpop.f32.mrf.mxu3  ;;  %v724_v17 = vpop.f32.mrf.mxu2 }
 0x13d   : > { %1753 = vmatpush.xpose.msra.mxu3 %v2478_v51  ;;  %v629_v55 = vpop.f32.mrf.mxu1  ;;  %v725_v9 = vadd.f32 %v724_v17, %v626_v11 }
 0x13e   : > { %1737 = vmatpush.xpose.msra.mxu2 %v2498_v44  ;;  %v1825_v44 = vmov 8.0  }
 0x13f   : > { %1798 = vrcp.f32 %v1825_v44  ;;  %v834_v26 = vadd.f32 %v833_v61, %v725_v9 }
 0x140   : > { %1442 = vmatpush.xpose.msra.mxu0 %v2510_v53  ;;  %1485 = vmatpush.xpose.msra.mxu1 %v2473_v30  ;;  %v1797_v30 = vpop.eup %1796 }
 0x141   : > { %1754 = vmatpush.xpose.msra.mxu3 %v2493_v59  ;;  %v1514_v24 = vmul.f32 64.0, %v1797_v30  ;;  %vm1518_vm1 = vweird.f32 %v1797_v30 }
 0x142   : > { %1738 = vmatpush.xpose.msra.mxu2 %v2510_v53 }
 0x143   : > { %v1515_v21 = vsub.f32 1.0, %v1514_v24 }
 0x144   : > { %1446 = vmatpush.xpose.msra.mxu0 %v2518_v19  ;;  %1487 = vmatpush.xpose.msra.mxu1 %v2478_v51  ;;  %v588_v51 = vpop.f32.mrf.mxu0  ;;  %v837_v40 = vpop.f32.mrf.mxu3 }
 0x145   : > { %1755 = vmatpush.xpose.msra.mxu3 %v2503_v35  ;;  %v732_v48 = vpop.f32.mrf.mxu2  ;;  %v1516_v18 = vmul.f32 %v1797_v30, %v1515_v21  ;;  %v1799_v53 = vpop.eup %1798 }
 0x146   : > { %1739 = vmatpush.xpose.msra.mxu2 %v2518_v19  ;;  %v1525_v19 = vmul.f32 8.0, %v1799_v53  ;;  %vm1529_vm2 = vweird.f32 %v1799_v53 }
 0x147   : > { %v1517_v20 = vadd.f32 %v1797_v30, %v1516_v18 }
 0x148   : > { %1450 = vmatpush.xpose.msra.mxu0 %v2526_v42  ;;  %1489 = vmatpush.xpose.msra.mxu1 %v2493_v59  ;;  %v1507_v59 = vlaneseq  ;;  %v1526_v52 = vsub.f32 1.0, %v1525_v19 }
 0x149   : > { %1756 = vmatpush.xpose.msra.mxu3 %v2513_v8  ;;  %v1519_v56 = vsel %vm1518_vm1, %v1797_v30, %v1517_v20 }
 0x14a   : > { %1740 = vmatpush.xpose.msra.mxu2 %v2526_v42  ;;  %v1508_v22 = vand.u32 127, %v1507_v59  ;;  %v1527_v6 = vmul.f32 %v1799_v53, %v1526_v52  ;;  %v1536_v17 = vshrl.u32 %v1507_v59, 7 }
 0x14c   : > { %1454 = vmatpush.xpose.msra.mxu0 %v2532_v0  ;;  %1491 = vmatpush.xpose.msra.mxu1 %v2503_v35  ;;  %v891_v38 = vpop.f32.mrf.mxu0  ;;  %v1509_v39 = vcvt.s32.f32 %v1508_v22  ;;  %v1528_v63 = vadd.f32 %v1799_v53, %v1527_v6 }
 0x14d   : > { %1757 = vmatpush.xpose.msra.mxu3 %v2522_v50 }
 0x14e   : > { %1741 = vmatpush.xpose.msra.mxu2 %v2532_v0  ;;  %v1512_v49 = vadd.f32 %v1511_v45, %v1509_v39  ;;  %v1530_v10 = vsel %vm1529_vm2, %v1799_v53, %v1528_v63  ;;  %v1537_v45 = vcvt.s32.f32 %v1536_v17 }
 0x14f   : > { %1456 = vmatmul.f32.vlgmr.msra.gmra.mxu0 %v2548_v54 }
 0x150   : > { %1493 = vmatpush.xpose.msra.mxu1 %v2513_v8  ;;  %1501 = vmatmul.f32.vlgmr.msra.gmra.mxu3 %v1173_v14  ;;  %v412_v8 = vadd.f32 %v411_v4, %v306_v46  ;;  %v1520_v12 = vmul.f32 %v1519_v56, %v1512_v49 }
 0x151   : > { %1460 = vmatmul.f32.vlgmr.msra.gmra.mxu2 %v1173_v14 }
 0x152   : > { %v1521_v16 = vfloor.f32 %v1520_v12 }
 0x154   : > { %1495 = vmatpush.xpose.msra.mxu1 %v2522_v50  ;;  %v935_v37 = vpop.f32.mrf.mxu1  ;;  %v1010_v34 = vpop.f32.mrf.mxu2  ;;  %v471_v50 = vadd.f32 %v470_v28, %v412_v8  ;;  %v892_v28 = vadd.f32 %v891_v38, %v834_v26  ;;  %v1539_v31 = vadd.f32 1.0, %v1521_v16 }
 0x155   : > { %v2620_v35 = vpop.f32.mrf.mxu3  ;;  %v896_v32 = vpop.f32.mrf.mxu0 }
 0x156   : > { %v516_v3 = vadd.f32 %v515_v13, %v471_v50  ;;  %v936_v30 = vadd.f32 %v935_v37, %v892_v28 }
 0x157   : > { %1497 = vmatmul.f32.vlgmr.msra.gmra.mxu1 %v2548_v54  ;;  %v1522_v54 = vmul.f32 64.0, %v1521_v16 }
 0x158   : > { %v589_v43 = vadd.f32 %v588_v51, %v516_v3 }
 0x159   : > { %v1523_v14 = vsub.f32 %v1512_v49, %v1522_v54 }
 0x15a   : > { %v630_v27 = vadd.f32 %v629_v55, %v589_v43 }
 0x15b   : > { %v1531_v15 = vmul.f32 %v1530_v10, %v1523_v14 }
 0x15c   : > { %v941_v42 = vpop.f32.mrf.mxu1  ;;  %v1014_v0 = vpop.f32.mrf.mxu2  ;;  %v733_v41 = vadd.f32 %v732_v48, %v630_v27  ;;  %v1011_v48 = vadd.f32 %v1010_v34, %v936_v30  ;;  %v1723_v34 = vadd.f32 -1.0, %v1537_v45 }
 0x15d   : > { %v1055_v60 = vpop.f32.mrf.mxu3  ;;  %v1532_v13 = vfloor.f32 %v1531_v15 }
 0x15e   : > { %v838_v33 = vadd.f32 %v837_v40, %v733_v41  ;;  %v1052_v38 = vadd.f32 %v2620_v35, %v1011_v48 }
 0x15f   : > { %v1533_v24 = vmul.f32 8.0, %v1532_v13  ;;  %v1542_v56 = vadd.f32 1.0, %v1532_v13 }
 0x160   : > { %v897_v51 = vadd.f32 %v896_v32, %v838_v33 }
 0x161   : > { %v1534_v61 = vsub.f32 %v1523_v14, %v1533_v24 }
 0x162   : > { %v942_v55 = vadd.f32 %v941_v42, %v897_v51 }
 0x163   : > { %v1544_v19 = vadd.f32 1.0, %v1534_v61 }
 0x164   : > { %v1015_v18 = vadd.f32 %v1014_v0, %v942_v55 }
 0x166   : > { %v1056_v47 = vadd.f32 %v1055_v60, %v1015_v18 }
 0x194   : > { %v1280_v1 = vpop.f32.mrf.mxu1  ;;  %v1338_v29 = vpop.f32.mrf.mxu2 }
 0x196   : > { %v1171_v36 = vpop.f32.mrf.mxu0 }
 0x197   : > { %v1281_v46 = vadd.f32 %v1280_v1, %v1171_v36 }
 0x199   : > { %v1382_v7 = vpop.f32.mrf.mxu3  ;;  %v1339_v58 = vadd.f32 %v1338_v29, %v1281_v46 }
 0x19b   : > { %v1383_v44 = vadd.f32 %v1382_v7, %v1339_v58 }
 0x19c   : > { %v1284_v5 = vpop.f32.mrf.mxu1 }
 0x1a0   : > { %v1179_v62 = vpop.f32.mrf.mxu0  ;;  %v1343_v25 = vpop.f32.mrf.mxu2 }
 0x1a1   : > { %v1285_v57 = vadd.f32 %v1284_v5, %v1179_v62 }
 0x1a2   : > { %v1388_v4 = vpop.f32.mrf.mxu3 }
 0x1a3   : > { %v1344_v21 = vadd.f32 %v1343_v25, %v1285_v57 }
 0x1a5   : > { %v1389_v39 = vadd.f32 %v1388_v4, %v1344_v21 }
 0x1cc   : > { %v1457_v22 = vpop.f32.mrf.mxu0 }
 0x1cd   : > { %v1458_v40 = vadd.f32 %v1457_v22, %v1383_v44 }
 0x1d3   : > { %v1502_v20 = vpop.f32.mrf.mxu3 }
 0x1d4   : > { %v1461_v53 = vpop.f32.mrf.mxu2  ;;  %v1498_v37 = vpop.f32.mrf.mxu1 }
 0x1d5   : > { %v1462_v8 = vadd.f32 %v1461_v53, %v1389_v39  ;;  %v1499_v49 = vadd.f32 %v1498_v37, %v1458_v40 }
 0x1d7   : > { %v1505_v59 = vadd.f32 %v1499_v49, %v1052_v38  ;;  %v1503_v32 = vadd.f32 %v1502_v20, %v1462_v8 }
 0x1d9   : > { %v1540_v50 = vadd.f32 %v1539_v31, %v1505_v59  ;;  %v1543_v12 = vadd.f32 %v1542_v56, %v1505_v59  ;;  %v1506_v42 = vadd.f32 %v1503_v32, %v1056_v47  ;;  %v1545_v52 = vadd.f32 %v1544_v19, %v1505_v59 }
 0x1db   : > { %v1541_v2 = vadd.f32 %v1723_v34, %v1540_v50  ;;  %vm1550_vm3 = vcmp.lt.f32.partialorder %v1543_v12, 0.0  ;;  %vm1551_vm4 = vcmp.gt.f32.partialorder %v1543_v12, 7.0  ;;  %v1561_v35 = vfloor.f32 %v1543_v12 }
 0x1dc   : > { %vm1552_vm5 = vmor %vm1550_vm3, %vm1551_vm4  ;;  %v1546_v0 = vadd.f32 %v1544_v19, %v1506_v42  ;;  %vm1553_vm6 = vcmp.lt.f32.partialorder %v1545_v52, 0.0  ;;  %vm1555_vm7 = vcmp.gt.f32.partialorder %v1545_v52, 7.0  ;;  %v1563_v3 = vfloor.f32 %v1545_v52 }
 0x1dd   : > { %vm1547_vm8 = vcmp.lt.f32.partialorder %v1541_v2, 1.0  ;;  %vm1548_vm9 = vcmp.gt.f32.partialorder %v1541_v2, 8.0  ;;  %v1559_v60 = vfloor.f32 %v1541_v2  ;;  %v1562_v16 = vsel %vm1552_vm5, %v1561_v35, %v1543_v12  ;;  %vm1557_vm10 = vmor %vm1553_vm6, %vm1555_vm7 }
 0x1de   : > { %vm1549_vm11 = vmor %vm1547_vm8, %vm1548_vm9  ;;  %v1569_v6 = vmax.f32 %v1562_v16, 0.0  ;;  %vm1554_vm12 = vcmp.lt.f32.partialorder %v1546_v0, 0.0  ;;  %vm1556_vm13 = vcmp.gt.f32.partialorder %v1546_v0, 7.0  ;;  %v1564_v23 = vfloor.f32 %v1546_v0 }
 0x1df   : > { %v1560_v36 = vsel %vm1549_vm11, %v1559_v60, %v1541_v2  ;;  %vm1558_vm14 = vmor %vm1554_vm12, %vm1556_vm13  ;;  %v1565_v43 = vsel %vm1557_vm10, %v1563_v3, %v1545_v52 }
 0x1e0   : > { %v1567_v54 = vmax.f32 %v1560_v36, 0.0  ;;  %v1570_v1 = vmin.f32 %v1569_v6, 7.0  ;;  %v1566_v63 = vsel %vm1558_vm14, %v1564_v23, %v1546_v0  ;;  %v1571_v7 = vmax.f32 %v1565_v43, 0.0 }
 0x1e1   : > { %v1572_v11 = vmax.f32 %v1566_v63, 0.0 }
 0x1e2   : > { %v1568_v29 = vmin.f32 %v1567_v54, 9.0  ;;  %v1763_v27 = vcvt.f32.s32 %v1570_v1  ;;  %v1573_v14 = vmin.f32 %v1571_v7, 7.0 }
 0x1e3   : > { %v1574_v10 = vmin.f32 %v1572_v11, 7.0 }
 0x1e4   : > { %v1760_v9 = vcvt.f32.s32 %v1568_v29  ;;  %v1580_v41 = vmul.u32 8, %v1763_v27  ;;  %v1766_v15 = vcvt.f32.s32 %v1573_v14 }
 0x1e5   : > { %v1769_v62 = vcvt.f32.s32 %v1574_v10 }
 0x1e6   : > { %v1579_v26 = vmul.u32 64, %v1760_v9  ;;  %v1581_v5 = vrot.slane %v1580_v41, 3  ;;  %v1584_v33 = vrot.slane %v1766_v15, 6 }
 0x1e7   : > { %v1585_v46 = vrot.slane %v1769_v62, 6 }
 0x1e8   : > { %v1582_v4 = vadd.s32 %v1581_v5, %v1579_v26 }
 0x1e9   : > { %v1586_v13 = vsel %vm1583_vm15, %v1584_v33, %v1585_v46 }
 0x1ea   : > { %v1587_v28 = vadd.s32 %v1586_v13, %v1582_v4 }
 0x1ec   : > { %1588 = vst [vmem:[%s163_s5] sm:$0x7] %v1587_v28 }
 0x1ed PF: > { %s12_s11 = sadd.s32 1, %s1822_s11   ;;  %s2643_s9 = smov %s1818_s10 }
 0x1ee   : > { %p9_p5 = scmp.ge.s32.totalorder %s12_s11, 6   ;;  %s2644_s10 = smov %s2646_s12 }
 0x1f0   :  { %11 = sbr.rel (!%p9_p5) target bundleno = 2 (0x2), region = 63 }

</bundles_post_ra>
